<compile_context>
chip_gen: v6e
topology: v6e:2x2x1
jax: 0.10.0
libtpu: 0.0.40
codegen_flags: <defaults>
</compile_context>

<pallas_src>
import functools

import jax
import jax.numpy as jnp
from jax.experimental import pallas as pl
from jax.experimental.pallas import tpu as pltpu

NUM_CLASSES = 53
FC_PAD = 128          # classifier output padded to a full lane width
ENET_OUT = 1280
STEM_C = 32           # efficientnet_b0 conv_stem output channels
IN_C = 3
K = 3                 # stem kernel size
STRIDE = 2
PAD = 1
KKC = K * K * IN_C    # 27
KKC_PAD = 32          # contraction dim padded to a sublane-aligned size


def _silu(x):
    # SiLU with sigmoid(x) = 0.5*(tanh(0.5*x)+1): a single EUP push per
    # element instead of exp + reciprocal.  Works in f32 or bf16.
    return x * (0.5 * jnp.tanh(0.5 * x) + 0.5)


# ----------------------------------------------------------------------------
# Fused Pallas kernel: stem conv -> head conv -> global pool -> classifier
# ----------------------------------------------------------------------------
def fused_kernel(p_ref, stem_w_ref, stem_b_ref,
                 head_w_ref, head_b_ref, pad_corr_ref,
                 fc_w_ref, fc_b_ref,
                 o_ref, acc_ref, *, inv_p):
    # p_ref:        [1, chunk, 32]   bf16 im2col patches (contraction padded 27->32)
    # stem_w_ref:   [32, 32]         bf16 stem conv weight, BN scale folded in
    # stem_b_ref:   [1, 32]          f32 folded BN bias
    # head_w_ref:   [32, 1280]       bf16 1x1 conv_head weight, BN scale folded in
    # head_b_ref:   [1, 1280]        f32 folded BN bias
    # pad_corr_ref: [1, 1280]        f32 pad-row contribution (subtract at finalize)
    # fc_w_ref:     [1280, 128]      bf16 classifier weight (cols padded 53->128)
    # fc_b_ref:     [1, 128]         f32 classifier bias (padded)
    # o_ref:        [1, 1, 128]      f32 padded logits for this image
    # acc_ref:      [1, 1280]        f32 VMEM pooled-sum accumulator
    c = pl.program_id(1)
    nc = pl.num_programs(1)

    @pl.when(c == 0)
    def _():
        acc_ref[...] = jnp.zeros_like(acc_ref)

    # ---- stem conv (im2col matmul, BN scale folded) + bias + SiLU (f32) ----
    s = jnp.dot(p_ref[0], stem_w_ref[...], preferred_element_type=jnp.float32)
    s = _silu(s + stem_b_ref[...])

    # ---- 1x1 conv_head (BN scale folded) + bias; SiLU in bf16 -------------
    h = jnp.dot(s.astype(jnp.bfloat16), head_w_ref[...],
                preferred_element_type=jnp.float32)
    h = _silu((h + head_b_ref[...]).astype(jnp.bfloat16))

    # Pooled-sum accumulation in f32 (padding rows handled at finalize).
    acc_ref[...] += jnp.sum(h.astype(jnp.float32), axis=0, keepdims=True)

    # ---- finalize: global average pool + classifier Linear(1280 -> 53) ----
    @pl.when(c == nc - 1)
    def _():
        pooled = (acc_ref[...] - pad_corr_ref[...]) * inv_p      # [1, 1280] f32
        o_ref[0] = (jnp.dot(pooled.astype(jnp.bfloat16), fc_w_ref[...],
                            preferred_element_type=jnp.float32)
                    + fc_b_ref[...])


# ----------------------------------------------------------------------------
# Wrapper
# ----------------------------------------------------------------------------
def _im2col(x_nhwc, k, stride, pad):
    # x_nhwc: [B, H, W, C] -> [B, Ho*Wo, k*k*C]   (patch order: kh, kw, cin)
    B, H, W, C = x_nhwc.shape
    xp = jnp.pad(x_nhwc, ((0, 0), (pad, pad), (pad, pad), (0, 0)))
    Ho = (H + 2 * pad - k) // stride + 1
    Wo = (W + 2 * pad - k) // stride + 1
    cols = []
    for di in range(k):
        for dj in range(k):
            cols.append(
                xp[:, di:di + stride * Ho:stride, dj:dj + stride * Wo:stride, :])
    patches = jnp.concatenate(cols, axis=-1)        # [B, Ho, Wo, k*k*C]
    return patches.reshape(B, Ho * Wo, k * k * C)


@functools.partial(jax.jit, static_argnames=("chunk",))
def simple_card_classifier(x_nchw, params, chunk=1792):
    B = x_nchw.shape[0]
    x = jnp.transpose(x_nchw, (0, 2, 3, 1)).astype(jnp.float32)   # NCHW -> NHWC

    patches = _im2col(x, K, STRIDE, PAD)            # [B, P, 27]
    P = patches.shape[1]

    # Static chunk sizing: sublane-aligned, never larger than (rounded-up) P.
    chunk = max(8, (chunk // 8) * 8)
    chunk = min(chunk, ((P + 7) // 8) * 8)
    nc = -(-P // chunk)                             # ceil div
    P_pad = nc * chunk
    pad_rows = P_pad - P

    # bf16 activations / matmul weights; contraction dim padded 27 -> 32.
    patches = jnp.pad(patches, ((0, 0), (0, P_pad - P), (0, KKC_PAD - KKC)))
    patches = patches.astype(jnp.bfloat16)

    # Fold BN scales into the conv weights (f32, BEFORE the bf16 cast).
    stem_w = params["stem_w"] * params["stem_scale"]               # [27, 32]
    stem_w = jnp.pad(stem_w, ((0, KKC_PAD - KKC), (0, 0))).astype(jnp.bfloat16)
    stem_b = params["stem_bias"]                                   # [1, 32] f32
    head_w = (params["head_w"] * params["head_scale"]).astype(jnp.bfloat16)
    head_b = params["head_bias"]                                   # [1, 1280] f32

    # Constant contribution each zero (spatial-pad) patch row makes through
    # stem + head, replicated along the kernel's exact dtype path so it
    # cancels at finalize.
    s_pad = _silu(stem_b)                                          # zero row -> bias
    h_pad = jnp.dot(s_pad.astype(jnp.bfloat16), head_w,
                    preferred_element_type=jnp.float32) + head_b
    h_pad = _silu(h_pad.astype(jnp.bfloat16)).astype(jnp.float32)
    pad_corr = float(pad_rows) * h_pad                             # [1, 1280] f32

    # Classifier: bf16 weight (cols padded 53 -> 128, lane-dense), f32 bias.
    fc_w = jnp.pad(params["fc_w"],
                   ((0, 0), (0, FC_PAD - NUM_CLASSES))).astype(jnp.bfloat16)
    fc_b = jnp.pad(params["fc_b"], ((0, 0), (0, FC_PAD - NUM_CLASSES)))

    kernel = functools.partial(fused_kernel, inv_p=1.0 / P)

    logits_pad = pl.pallas_call(
        kernel,
        out_shape=jax.ShapeDtypeStruct((B, 1, FC_PAD), jnp.float32),
        grid_spec=pltpu.PrefetchScalarGridSpec(
            num_scalar_prefetch=0,
            grid=(B, nc),
            in_specs=[
                pl.BlockSpec((1, chunk, KKC_PAD), lambda b, c: (b, c, 0)),
                pl.BlockSpec((KKC_PAD, STEM_C), lambda b, c: (0, 0)),
                pl.BlockSpec((1, STEM_C), lambda b, c: (0, 0)),
                pl.BlockSpec((STEM_C, ENET_OUT), lambda b, c: (0, 0)),
                pl.BlockSpec((1, ENET_OUT), lambda b, c: (0, 0)),
                pl.BlockSpec((1, ENET_OUT), lambda b, c: (0, 0)),
                pl.BlockSpec((ENET_OUT, FC_PAD), lambda b, c: (0, 0)),
                pl.BlockSpec((1, FC_PAD), lambda b, c: (0, 0)),
            ],
            out_specs=pl.BlockSpec((1, 1, FC_PAD), lambda b, c: (b, 0, 0)),
            scratch_shapes=[pltpu.VMEM((1, ENET_OUT), jnp.float32)],
        ),
        compiler_params=pltpu.CompilerParams(
            dimension_semantics=("parallel", "arbitrary"),
            vmem_limit_bytes=32 * 1024 * 1024),
    )(patches, stem_w, stem_b, head_w, head_b, pad_corr, fc_w, fc_b)

    return logits_pad[:, 0, :NUM_CLASSES]           # [B, 53] f32


def init_params(key):
    ks = jax.random.split(key, 8)
    eps = 1e-3

    def fold_bn(gamma, beta, mean, var):
        scale = gamma * jax.lax.rsqrt(var + eps)
        bias = beta - mean * scale
        return scale, bias

    # stem conv weight: (kh*kw*cin, cout) ordering matches _im2col patch order
    stem_w = jax.random.normal(ks[0], (KKC, STEM_C), jnp.float32) * 0.1
    stem_scale, stem_bias = fold_bn(
        1.0 + 0.1 * jax.random.normal(ks[1], (STEM_C,), jnp.float32),
        0.1 * jax.random.normal(ks[2], (STEM_C,), jnp.float32),
        jnp.zeros((STEM_C,), jnp.float32),
        jnp.ones((STEM_C,), jnp.float32),
    )

    head_w = jax.random.normal(ks[3], (STEM_C, ENET_OUT), jnp.float32) * 0.05
    head_scale, head_bias = fold_bn(
        1.0 + 0.1 * jax.random.normal(ks[4], (ENET_OUT,), jnp.float32),
        0.1 * jax.random.normal(ks[5], (ENET_OUT,), jnp.float32),
        jnp.zeros((ENET_OUT,), jnp.float32),
        jnp.ones((ENET_OUT,), jnp.float32),
    )

    fc_w = jax.random.normal(ks[6], (ENET_OUT, NUM_CLASSES), jnp.float32) * 0.02
    fc_b = 0.01 * jax.random.normal(ks[7], (NUM_CLASSES,), jnp.float32)

    return {
        "stem_w": stem_w,
        "stem_scale": stem_scale.reshape(1, STEM_C),
        "stem_bias": stem_bias.reshape(1, STEM_C),
        "head_w": head_w,
        "head_scale": head_scale.reshape(1, ENET_OUT),
        "head_bias": head_bias.reshape(1, ENET_OUT),
        "fc_w": fc_w,
        "fc_b": fc_b.reshape(1, NUM_CLASSES),
    }


if __name__ == "__main__":
    key = jax.random.PRNGKey(0)
    k_x, k_p = jax.random.split(key)
    # PyTorch-style NCHW input (small spatial size for the synthetic run).
    x = jax.random.normal(k_x, (2, 3, 32, 32), jnp.float32)
    params = init_params(k_p)

    # chunk=96 so the toy P=256 exercises both the multi-chunk accumulation
    # path (nc=3) and the pad-row correction (P_pad=288 > P).
    logits = simple_card_classifier(x, params, chunk=96)
    jax.block_until_ready(logits)
    assert logits.shape == (2, NUM_CLASSES) and logits.dtype == jnp.float32
    print("KERNEL_OK")
</pallas_src>

<mosaic_0001>
module attributes {stable_mosaic.version = 11 : i64} {
  func.func @fused_kernel(%arg0: i32, %arg1: i32, %arg2: memref<1x96x32xbf16, #tpu.memory_space<vmem>>, %arg3: memref<32x32xbf16, #tpu.memory_space<vmem>>, %arg4: memref<1x32xf32, #tpu.memory_space<vmem>>, %arg5: memref<32x1280xbf16, #tpu.memory_space<vmem>>, %arg6: memref<1x1280xf32, #tpu.memory_space<vmem>>, %arg7: memref<1x1280xf32, #tpu.memory_space<vmem>>, %arg8: memref<1280x128xbf16, #tpu.memory_space<vmem>>, %arg9: memref<1x128xf32, #tpu.memory_space<vmem>>, %arg10: memref<1x1x128xf32, #tpu.memory_space<vmem>>, %arg11: memref<1x1280xf32, #tpu.memory_space<vmem>>) attributes {dimension_semantics = [#tpu.dimension_semantics<parallel>, #tpu.dimension_semantics<arbitrary>], iteration_bounds = array<i64: 2, 3>, scalar_prefetch = 0 : i64, scratch_operands = 1 : i64, tpu.core_type = #tpu.core_type<tc>, window_params = [{transform_indices = @transform_0, window_bounds = array<i64: 1, 96, 32>}, {pipeline_mode = #tpu.pipeline_mode<synchronous>, transform_indices = @transform_1, window_bounds = array<i64: 32, 32>}, {pipeline_mode = #tpu.pipeline_mode<synchronous>, transform_indices = @transform_2, window_bounds = array<i64: 1, 32>}, {pipeline_mode = #tpu.pipeline_mode<synchronous>, transform_indices = @transform_3, window_bounds = array<i64: 32, 1280>}, {pipeline_mode = #tpu.pipeline_mode<synchronous>, transform_indices = @transform_4, window_bounds = array<i64: 1, 1280>}, {pipeline_mode = #tpu.pipeline_mode<synchronous>, transform_indices = @transform_5, window_bounds = array<i64: 1, 1280>}, {pipeline_mode = #tpu.pipeline_mode<synchronous>, transform_indices = @transform_6, window_bounds = array<i64: 1280, 128>}, {pipeline_mode = #tpu.pipeline_mode<synchronous>, transform_indices = @transform_7, window_bounds = array<i64: 1, 128>}, {transform_indices = @transform_8, window_bounds = array<i64: 1, 1, 128>}]} {
    %c0_i32 = arith.constant 0 : i32
    %0 = arith.cmpi eq, %arg1, %c0_i32 : i32
    %1 = arith.extui %0 : i1 to i32
    %c0_i32_0 = arith.constant 0 : i32
    %2 = arith.cmpi ne, %1, %c0_i32_0 : i32
    scf.if %2 {
      %cst_24 = arith.constant 0.000000e+00 : f32
      %42 = vector.broadcast %cst_24 : f32 to vector<1x1280xf32>
      %c0_25 = arith.constant 0 : index
      %c0_26 = arith.constant 0 : index
      %43 = vector.load %arg11[%c0_25, %c0_26] : memref<1x1280xf32, #tpu.memory_space<vmem>>, vector<1x1280xf32>
      tpu.vector_store %arg11[%c0_25, %c0_26], %42 {strides = array<i32>} : memref<1x1280xf32, #tpu.memory_space<vmem>>, vector<1x1280xf32>,
    } else {
    }
    %c0 = arith.constant 0 : index
    %c0_1 = arith.constant 0 : index
    %c0_2 = arith.constant 0 : index
    %3 = vector.load %arg2[%c0, %c0_1, %c0_2] : memref<1x96x32xbf16, #tpu.memory_space<vmem>>, vector<1x96x32xbf16>
    %4 = vector.shape_cast %3 : vector<1x96x32xbf16> to vector<96x32xbf16>
    %c0_3 = arith.constant 0 : index
    %c0_4 = arith.constant 0 : index
    %5 = vector.load %arg3[%c0_3, %c0_4] : memref<32x32xbf16, #tpu.memory_space<vmem>>, vector<32x32xbf16>
    %cst = arith.constant dense<0.000000e+00> : vector<96x32xf32>
    %6 = tpu.matmul %4, %5, %cst {dimension_numbers = #tpu.dot_dimension_numbers<[1], [0], [0], [1], [0, 0, 1, 1], [], []>} : vector<96x32xbf16>, vector<32x32xbf16>, vector<96x32xf32> -> vector<96x32xf32>
    %c0_5 = arith.constant 0 : index
    %c0_6 = arith.constant 0 : index
    %7 = vector.load %arg4[%c0_5, %c0_6] : memref<1x32xf32, #tpu.memory_space<vmem>>, vector<1x32xf32>
    %8 = vector.broadcast %7 : vector<1x32xf32> to vector<96x32xf32>
    %9 = arith.addf %6, %8 : vector<96x32xf32>
    %cst_7 = arith.constant 5.000000e-01 : f32
    %10 = vector.broadcast %cst_7 : f32 to vector<96x32xf32>
    %11 = arith.mulf %10, %9 : vector<96x32xf32>
    %12 = math.tanh %11 : vector<96x32xf32>
    %cst_8 = arith.constant 5.000000e-01 : f32
    %13 = vector.broadcast %cst_8 : f32 to vector<96x32xf32>
    %14 = arith.mulf %13, %12 : vector<96x32xf32>
    %cst_9 = arith.constant 5.000000e-01 : f32
    %15 = vector.broadcast %cst_9 : f32 to vector<96x32xf32>
    %16 = arith.addf %14, %15 : vector<96x32xf32>
    %17 = arith.mulf %9, %16 : vector<96x32xf32>
    %18 = arith.truncf %17 : vector<96x32xf32> to vector<96x32xbf16>
    %c0_10 = arith.constant 0 : index
    %c0_11 = arith.constant 0 : index
    %19 = vector.load %arg5[%c0_10, %c0_11] : memref<32x1280xbf16, #tpu.memory_space<vmem>>, vector<32x1280xbf16>
    %cst_12 = arith.constant dense<0.000000e+00> : vector<96x1280xf32>
    %20 = tpu.matmul %18, %19, %cst_12 {dimension_numbers = #tpu.dot_dimension_numbers<[1], [0], [0], [1], [0, 0, 1, 1], [], []>} : vector<96x32xbf16>, vector<32x1280xbf16>, vector<96x1280xf32> -> vector<96x1280xf32>
    %c0_13 = arith.constant 0 : index
    %c0_14 = arith.constant 0 : index
    %21 = vector.load %arg6[%c0_13, %c0_14] : memref<1x1280xf32, #tpu.memory_space<vmem>>, vector<1x1280xf32>
    %22 = vector.broadcast %21 : vector<1x1280xf32> to vector<96x1280xf32>
    %23 = arith.addf %20, %22 : vector<96x1280xf32>
    %24 = arith.truncf %23 : vector<96x1280xf32> to vector<96x1280xbf16>
    %cst_15 = arith.constant 5.000000e-01 : bf16
    %25 = vector.broadcast %cst_15 : bf16 to vector<96x1280xbf16>
    %26 = arith.mulf %25, %24 : vector<96x1280xbf16>
    %27 = math.tanh %26 : vector<96x1280xbf16>
    %cst_16 = arith.constant 5.000000e-01 : bf16
    %28 = vector.broadcast %cst_16 : bf16 to vector<96x1280xbf16>
    %29 = arith.mulf %28, %27 : vector<96x1280xbf16>
    %cst_17 = arith.constant 5.000000e-01 : bf16
    %30 = vector.broadcast %cst_17 : bf16 to vector<96x1280xbf16>
    %31 = arith.addf %29, %30 : vector<96x1280xbf16>
    %32 = arith.mulf %24, %31 : vector<96x1280xbf16>
    %c0_18 = arith.constant 0 : index
    %c0_19 = arith.constant 0 : index
    %33 = vector.load %arg11[%c0_18, %c0_19] : memref<1x1280xf32, #tpu.memory_space<vmem>>, vector<1x1280xf32>
    %34 = arith.extf %32 : vector<96x1280xbf16> to vector<96x1280xf32>
    %cst_20 = arith.constant dense<0.000000e+00> : vector<1280xf32>
    %35 = vector.multi_reduction <add>, %34, %cst_20 [0] : vector<96x1280xf32> to vector<1280xf32>
    %36 = vector.shape_cast %35 : vector<1280xf32> to vector<1x1280xf32>
    %37 = arith.addf %33, %36 : vector<1x1280xf32>
    %c0_21 = arith.constant 0 : index
    %c0_22 = arith.constant 0 : index
    %38 = vector.load %arg11[%c0_21, %c0_22] : memref<1x1280xf32, #tpu.memory_space<vmem>>, vector<1x1280xf32>
    tpu.vector_store %arg11[%c0_21, %c0_22], %37 {strides = array<i32>} : memref<1x1280xf32, #tpu.memory_space<vmem>>, vector<1x1280xf32>,
    %c2_i32 = arith.constant 2 : i32
    %39 = arith.cmpi eq, %arg1, %c2_i32 : i32
    %40 = arith.extui %39 : i1 to i32
    %c0_i32_23 = arith.constant 0 : i32
    %41 = arith.cmpi ne, %40, %c0_i32_23 : i32
    scf.if %41 {
      %c0_24 = arith.constant 0 : index
      %c0_25 = arith.constant 0 : index
      %42 = vector.load %arg11[%c0_24, %c0_25] : memref<1x1280xf32, #tpu.memory_space<vmem>>, vector<1x1280xf32>
      %c0_26 = arith.constant 0 : index
      %c0_27 = arith.constant 0 : index
      %43 = vector.load %arg7[%c0_26, %c0_27] : memref<1x1280xf32, #tpu.memory_space<vmem>>, vector<1x1280xf32>
      %44 = arith.subf %42, %43 : vector<1x1280xf32>
      %cst_28 = arith.constant 3.906250e-03 : f32
      %45 = vector.broadcast %cst_28 : f32 to vector<1x1280xf32>
      %46 = arith.mulf %44, %45 : vector<1x1280xf32>
      %47 = arith.truncf %46 : vector<1x1280xf32> to vector<1x1280xbf16>
      %c0_29 = arith.constant 0 : index
      %c0_30 = arith.constant 0 : index
      %48 = vector.load %arg8[%c0_29, %c0_30] : memref<1280x128xbf16, #tpu.memory_space<vmem>>, vector<1280x128xbf16>
      %cst_31 = arith.constant dense<0.000000e+00> : vector<1x128xf32>
      %49 = tpu.matmul %47, %48, %cst_31 {dimension_numbers = #tpu.dot_dimension_numbers<[1], [0], [0], [1], [0, 0, 1, 1], [], []>} : vector<1x1280xbf16>, vector<1280x128xbf16>, vector<1x128xf32> -> vector<1x128xf32>
      %c0_32 = arith.constant 0 : index
      %c0_33 = arith.constant 0 : index
      %50 = vector.load %arg9[%c0_32, %c0_33] : memref<1x128xf32, #tpu.memory_space<vmem>>, vector<1x128xf32>
      %51 = arith.addf %49, %50 : vector<1x128xf32>
      %c0_34 = arith.constant 0 : index
      %c0_35 = arith.constant 0 : index
      %c0_36 = arith.constant 0 : index
      %52 = vector.load %arg10[%c0_34, %c0_35, %c0_36] : memref<1x1x128xf32, #tpu.memory_space<vmem>>, vector<1x1x128xf32>
      %53 = vector.shape_cast %52 : vector<1x1x128xf32> to vector<1x128xf32>
      %54 = vector.shape_cast %51 : vector<1x128xf32> to vector<1x1x128xf32>
      tpu.vector_store %arg10[%c0_34, %c0_35, %c0_36], %54 {strides = array<i32>} : memref<1x1x128xf32, #tpu.memory_space<vmem>>, vector<1x1x128xf32>,
    } else {
    }
    return
  }
  func.func @transform_0(%arg0: i32, %arg1: i32) -> (i32, i32, i32) {
    %c0_i32 = arith.constant 0 : i32
    %c0_i32_0 = arith.constant 0 : i32
    return %arg0, %arg1, %c0_i32 : i32, i32, i32
  }
  func.func @transform_1(%arg0: i32, %arg1: i32) -> (i32, i32) {
    %c0_i32 = arith.constant 0 : i32
    %c0_i32_0 = arith.constant 0 : i32
    %c0_i32_1 = arith.constant 0 : i32
    return %c0_i32, %c0_i32_0 : i32, i32
  }
  func.func @transform_2(%arg0: i32, %arg1: i32) -> (i32, i32) {
    %c0_i32 = arith.constant 0 : i32
    %c0_i32_0 = arith.constant 0 : i32
    %c0_i32_1 = arith.constant 0 : i32
    return %c0_i32, %c0_i32_0 : i32, i32
  }
  func.func @transform_3(%arg0: i32, %arg1: i32) -> (i32, i32) {
    %c0_i32 = arith.constant 0 : i32
    %c0_i32_0 = arith.constant 0 : i32
    %c0_i32_1 = arith.constant 0 : i32
    return %c0_i32, %c0_i32_0 : i32, i32
  }
  func.func @transform_4(%arg0: i32, %arg1: i32) -> (i32, i32) {
    %c0_i32 = arith.constant 0 : i32
    %c0_i32_0 = arith.constant 0 : i32
    %c0_i32_1 = arith.constant 0 : i32
    return %c0_i32, %c0_i32_0 : i32, i32
  }
  func.func @transform_5(%arg0: i32, %arg1: i32) -> (i32, i32) {
    %c0_i32 = arith.constant 0 : i32
    %c0_i32_0 = arith.constant 0 : i32
    %c0_i32_1 = arith.constant 0 : i32
    return %c0_i32, %c0_i32_0 : i32, i32
  }
  func.func @transform_6(%arg0: i32, %arg1: i32) -> (i32, i32) {
    %c0_i32 = arith.constant 0 : i32
    %c0_i32_0 = arith.constant 0 : i32
    %c0_i32_1 = arith.constant 0 : i32
    return %c0_i32, %c0_i32_0 : i32, i32
  }
  func.func @transform_7(%arg0: i32, %arg1: i32) -> (i32, i32) {
    %c0_i32 = arith.constant 0 : i32
    %c0_i32_0 = arith.constant 0 : i32
    %c0_i32_1 = arith.constant 0 : i32
    return %c0_i32, %c0_i32_0 : i32, i32
  }
  func.func @transform_8(%arg0: i32, %arg1: i32) -> (i32, i32, i32) {
    %c0_i32 = arith.constant 0 : i32
    %c0_i32_0 = arith.constant 0 : i32
    %c0_i32_1 = arith.constant 0 : i32
    return %arg0, %c0_i32, %c0_i32_0 : i32, i32, i32
  }
}

</mosaic_0001>

<bundles_post_ra>
// kernel: simple_card_classifier.1
= control target key start
LH: loop header
LB: loop body
LE: loop exit
PB: predicated region body
PF: predicated region fallthrough
CT: control target
= control target key end

     0   :  { %13 = vsyncpa [#allocation4], 0  ;;  %s5101_s0 = inlined_call_operand.vmem [shape: bf16[2,288,32], index: 0, kind: input, shape index: {}]   ;;  %s5102_s1 = inlined_call_operand.vmem [shape: bf16[32,32], index: 1, kind: input, shape index: {}]   ;;  %s5103_s2 = inlined_call_operand.vmem [shape: f32[1,32], index: 2, kind: input, shape index: {}]   ;;  %s5104_s3 = inlined_call_operand.vmem [shape: bf16[32,1280], index: 3, kind: input, shape index: {}]   ;;  %s5105_s4 = inlined_call_operand.vmem [shape: f32[1,1280], index: 4, kind: input, shape index: {}]   ;;  %s5106_s5 = inlined_call_operand.vmem [shape: f32[1,1280], index: 5, kind: input, shape index: {}]   ;;  %s5107_s6 = inlined_call_operand.vmem [shape: bf16[1280,128], index: 6, kind: input, shape index: {}]   ;;  %s5108_s7 = inlined_call_operand.vmem [shape: f32[1,128], index: 7, kind: input, shape index: {}]   ;;  %s5109_s8 = inlined_call_operand.hbm [shape: f32[2,1,128], index: 8, kind: output, shape index: {}]  }
   0x1   :  { %15 = vsyncpa [#allocation4 + $0x1], 0  ;;  %s3742_s27 = smov 0   ;;  %s3744_s28 = smov 0  }
   0x2   :  { %s3746_s29 = smov 0   ;;  %s3748_s30 = smov 0  }
   0x3   :  { %s3750_s9 = smov 0   ;;  %s3752_s10 = smov 0  }
   0x4   :  { %s3754_s11 = smov 0   ;;  %s3756_s12 = smov 0  }
   0x5 LB: > { %s2968_s13 = sadd.s32 4294967295, %s3691_s12   ;;  %s2969_s14 = sadd.s32 4294967294, %s3691_s12   ;;  %s3691_s12 = sphi %s3756_s12, %s21_s12   ;;  %s3687_s11 = sphi %s3754_s11, %s5161_s11   ;;  %s3683_s10 = sphi %s3752_s10, %s5160_s10   ;;  %s3679_s9 = sphi %s3750_s9, %s5159_s9   ;;  %s3675_s30 = sphi %s3748_s30, %s5158_s30   ;;  %s3671_s29 = sphi %s3746_s29, %s5157_s29   ;;  %s3667_s28 = sphi %s3744_s28, %s5156_s28   ;;  %s3663_s27 = sphi %s3742_s27, %s5155_s27  }
   0x6   : > { %s30_s15 = sadd.s32 1, %s3683_s10  ;;  %s33_s16 = sadd.s32 1, %s3687_s11 }
   0x7   : > { %p31_p0 = scmp.ge.s32.totalorder %s30_s15, 3  ;;  %p225_p1 = scmp.ne.s32.totalorder %s3671_s29, %s3667_s28 }
   0x8   : > { %p226_p2 = scmp.eq.s32.totalorder %s2968_s13, 5  ;;  %p231_p4 = scmp.ne.s32.totalorder %s3667_s28, %s3663_s27 }
   0x9   : > { %s5163_s15 = smov (%p31_p0, %s30_s15), 0  ;;  %s5165_s16 = smov (!%p31_p0, %s33_s16), %s3687_s11 }
   0xa   : > { %5124 = sst [smem:[#allocation6_spill]] %s5163_s15  ;;  %p3791_p3 = por %p226_p2, %p225_p1 }
   0xb   : > { %p35_p5 = scmp.ge.s32.totalorder %s5165_s16, 2  ;;  %p232_p6 = scmp.eq.s32.totalorder %s2969_s14, 5 }
   0xc   : > { %p2972_p7 = scmp.ge.s32.totalorder %s3691_s12, 1  ;;  %p284_p8 = scmp.lt.s32.totalorder %s3691_s12, 7 }
   0xd   : > { %s5167_s16 = smov (%p35_p5, %s5165_s16), 0  ;;  %p3801_p9 = por %p232_p6, %p231_p4 }
   0xe   : > { %5126 = sst [smem:[#allocation7_spill]] %s5167_s16  ;;  %p285_p10 = pnand %p2972_p7, %p284_p8 }
   0xf   : > { %s212_s19 = ssub.s32 %s3687_s11, %s5167_s16  ;;  %s215_s20 = sadd.s32 1, %s3671_s29 }
  0x10   : > { %p213_p11 = scmp.eq.s32.totalorder %s212_s19, 0  ;;  %288 = sbr.rel (%p285_p10) target bundleno = 1015 (0x3f7), region = 52 }
  0x12   : > { %s3809_s21 = scalar_select %p213_p11, %s3671_s29, %s215_s20  }
  0x15   : > { %s319_s22 = sand.u32 1, %s3667_s28   ;;  %s321_s23 = smul.u32 12, %s3675_s30 }
  0x16   : > { %p322_p12 = scmp.lt.s32.totalorder %s3679_s9, 1  ;;  %s3820_s20 = scalar_lea.vmem [#allocation3], %s319_s22 }
  0x17   : > { %p324_p13 = scmp.lt.s32.totalorder %s321_s23, 35  ;;  %p2974_p0 = scmp.ne.s32.totalorder %s3675_s30, 0 }
  0x18   : > { %s323_s24 = scalar_select %p322_p12, %s3679_s9, 1 }
  0x19   : > { %s5169_s23 = smov (!%p324_p13, %s321_s23), 35 }
  0x1a   : > { %s3262_s25 = smul.u32 36, %s323_s24 }
  0x1b   : > { %336 = sbr.rel (%p2974_p0) target bundleno = 36 (0x24), region = 56 }
  0x1c   : > { %s327_s26 = sadd.s32 %s3262_s25, %s5169_s23 }
  0x1d   : > { %s2973_s13 = sshll.u32 %s327_s26, 2 }
  0x1e   : > { %s329_s19 = scalar_lea.vmem %s5101_s0, %s2973_s13 }
  0x20   : > { %v338_v0 = vlaneseq  ;;  %v3693_v1 = vmov 0.0  }
  0x21   : > { %337 = vst [vmem:[#allocation2] sm:$0xff] %v3693_v1 }
  0x22   : > { %vm340_vm0 = vcmp.lt.s32.totalorder %v338_v0, 256 }
  0x23   : > { %342 = vst.msk [vmem:[#allocation2 + $0x8] sm:$0x3] %vm340_vm0, %v3693_v1 }
  0x24 PF: > { %v3337_v2 = vld [vmem:[%s5102_s1 + $0x8] sm:$0xff]   ;;  %v3338_v3 = vld [vmem:[%s5102_s1] sm:$0xff]   ;;  %vm408_vm1 = vcmask 261120   ;;  %v3341_v6 = vld [vmem:[%s329_s19 + $0x10] sm:$0xff]   ;;  %v3694_v14 = vmov 0   ;;  %p3040_p1 = scmp.ne.s32.totalorder %s3675_s30, 2 }
  0x25   : > { %3242 = vmatprep.subr.bf16.mxu0 %v3337_v2  ;;  %v3339_v4 = vld [vmem:[%s329_s19] sm:$0xff]   ;;  %v3340_v5 = vld [vmem:[%s329_s19 + $0x8] sm:$0xff]   ;;  %v3342_v7 = vld [vmem:[%s329_s19 + $0x18] sm:$0xff]   ;;  %808 = vmatprep.mubr.bf16.mxu1 %v3694_v14 }
  0x26   : > { %3243 = vmatpush3.bf16.msra.mxu0 %v3337_v2  ;;  %3246 = vmatprep.mubr.msk.bf16.mxu0 %vm408_vm1, %v3339_v4  ;;  %v3343_v8 = vld [vmem:[%s329_s19 + $0x20] sm:$0xff]   ;;  %v3344_v9 = vld [vmem:[%s329_s19 + $0x28] sm:$0xff]   ;;  %v3345_v10 = vld [vmem:[%s5104_s3 + $0x54] ss:$40 sps:$4 sm:$0xff]  }
  0x27   : > { %3244 = vmatprep.subr.bf16.mxu0 %v3338_v3  ;;  %v3347_v11 = vld [vmem:[%s5104_s3 + $0x50] ss:$40 sps:$4 sm:$0xff]   ;;  %3258 = vmatprep.subr.bf16.mxu1 %v3345_v10  ;;  %v3348_v12 = vld [vmem:[%s5104_s3 + $0x4] ss:$40 sps:$4 sm:$0xff]   ;;  %v3350_v13 = vld [vmem:[%s5104_s3] ss:$40 sps:$4 sm:$0xff]  }
  0x28   : > { %3260 = vmatpush1.bf16.msra.mxu1 %v3347_v11  ;;  %v3356_v15 = vld [vmem:[%s5104_s3 + $0x5c] ss:$40 sps:$4 sm:$0xff]   ;;  %v2975_v17 = vld [vmem:[%s5103_s2] ss:$0 sm:$0xff] }
  0x29   : > { %3259 = vmatprep.subr.bf16.mxu1 %v3348_v12  ;;  %v3353_v16 = vld [vmem:[%s5104_s3 + $0x64] ss:$40 sps:$4 sm:$0xff]  }
  0x2a   : > { %3245 = vmatpush3.bf16.msra.mxu0 %v3338_v3  ;;  %v3351_v3 = vld [vmem:[%s5104_s3 + $0x60] ss:$40 sps:$4 sm:$0xff]  }
  0x2b   : > { %778 = vmatprep.subr.bf16.mxu0 %v3345_v10 }
  0x2c   : > { %3261 = vmatpush1.bf16.msra.mxu1 %v3350_v13 }
  0x2d   : > { %3247 = vmatmul.mubr.msk.bf16.vlgmr.msra.gmra.mxu0 %vm408_vm1, %v3340_v5  ;;  %964 = vmatprep.subr.bf16.mxu1 %v3353_v16  ;;  %v3360_v16 = vld [vmem:[%s5104_s3 + $0x10] ss:$40 sps:$4 sm:$0xff]  }
  0x2e   : > { %3250 = vmatprep.mubr.msk.bf16.mxu0 %vm408_vm1, %v3341_v6  ;;  %779 = vmatpush1.bf16.msra.mxu0 %v3347_v11 }
  0x2f   : > { %780 = vmatprep.subr.bf16.mxu0 %v3348_v12 }
  0x32   : > { %781 = vmatpush1.bf16.msra.mxu0 %v3350_v13  ;;  %v3359_v13 = vld [vmem:[%s5104_s3 + $0xc] ss:$40 sps:$4 sm:$0xff]  }
  0x33   : > { %871 = vmatprep.subr.bf16.mxu0 %v3356_v15 }
  0x35   : > { %3251 = vmatmul.mubr.msk.bf16.gmra.mxu0 %vm408_vm1, %v3342_v7 }
  0x36   : > { %3254 = vmatprep.mubr.msk.bf16.mxu0 %vm408_vm1, %v3343_v8  ;;  %v3362_v8 = vld [vmem:[%s5104_s3 + $0x14] ss:$40 sps:$4 sm:$0xff]  }
  0x3d   : > { %3255 = vmatmul.mubr.msk.bf16.gmra.mxu0 %vm408_vm1, %v3344_v9  ;;  %v3354_v9 = vld [vmem:[%s5104_s3 + $0x58] ss:$40 sps:$4 sm:$0xff]  }
  0x3e   : > { %798 = vmatprep.mubr.bf16.mxu0 %v3694_v14 }
  0xed   : > { %v3248_v18 = vpop.f32.mrf.mxu0 }
  0xee   : > { %v470_v19 = vadd.f32 %v3248_v18, %v2975_v17 }
  0xef   : > { %v461_v20 = vpop.f32.mrf.mxu0 }
  0xf0   : > { %v510_v21 = vmul.f32 0.5, %v470_v19  ;;  %v462_v22 = vadd.f32 %v2975_v17, %v461_v20  ;;  %v3368_v20 = vld [vmem:[%s5104_s3 + $0x74] ss:$40 sps:$4 sm:$0xff]  }
  0xf1   : > { %v3249_v23 = vpop.f32.mrf.mxu0 }
  0xf2   : > { %3375 = vtanh.f32 %v510_v21  ;;  %v508_v24 = vmul.f32 0.5, %v462_v22  ;;  %v473_v25 = vadd.f32 %v3249_v23, %v2975_v17 }
  0xf3   : > { %v464_v26 = vpop.f32.mrf.mxu0 }
  0xf4   : > { %3377 = vtanh.f32 %v508_v24  ;;  %v511_v27 = vmul.f32 0.5, %v473_v25  ;;  %v465_v28 = vadd.f32 %v2975_v17, %v464_v26 }
  0xf5   : > { %v3252_v29 = vpop.f32.mrf.mxu0 }
  0xf6   : > { %3379 = vtanh.f32 %v511_v27  ;;  %v509_v30 = vmul.f32 0.5, %v465_v28  ;;  %v3860_v34 = vadd.f32 %v3252_v29, %v2975_v17 }
  0xf7   : > { %v477_v31 = vpop.f32.mrf.mxu0 }
  0xf8   : > { %3381 = vtanh.f32 %v509_v30  ;;  %v3858_v32 = vadd.f32 %v2975_v17, %v477_v31  ;;  %v514_v41 = vmul.f32 0.5, %v3860_v34  ;;  %v3363_v31 = vld [vmem:[%s5104_s3 + $0x68] ss:$40 sps:$4 sm:$0xff]  }
  0xf9   : > { %v3253_v33 = vpop.f32.mrf.mxu0 }
  0xfa   : > { %v512_v35 = vmul.f32 0.5, %v3858_v32  ;;  %v3863_v36 = vadd.f32 %v3253_v33, %v2975_v17 }
  0xfb   : > { %v480_v37 = vpop.f32.mrf.mxu0 }
  0xfc   : > { %3383 = vtanh.f32 %v512_v35  ;;  %v515_v38 = vmul.f32 0.5, %v3863_v36  ;;  %v3866_v39 = vadd.f32 %v2975_v17, %v480_v37  ;;  %v3371_v35 = vld [vmem:[%s5104_s3 + $0x1c] ss:$40 sps:$4 sm:$0xff]  }
  0xfd   : > { %v3256_v40 = vpop.f32.mrf.mxu0 }
  0xfe   : > { %v513_v42 = vmul.f32 0.5, %v3866_v39  ;;  %3385 = vtanh.f32 %v515_v38  ;;  %v3878_v2 = vadd.f32 %v3256_v40, %v2975_v17  ;;  %v3369_v40 = vld [vmem:[%s5104_s3 + $0x18] ss:$40 sps:$4 sm:$0xff]  }
  0xff   : > { %v3376_v43 = vpop.eup %3375  ;;  %v493_v44 = vpop.f32.mrf.mxu0 }
 0x100   : > { %v534_v45 = vmul.f32 0.5, %v3376_v43  ;;  %3387 = vtanh.f32 %v513_v42  ;;  %v3870_v46 = vadd.f32 %v2975_v17, %v493_v44 }
 0x101   : > { %v3378_v47 = vpop.eup %3377  ;;  %v3257_v48 = vpop.f32.mrf.mxu0  ;;  %3389 = vtanh.f32 %v514_v41 }
 0x102   : > { %v532_v49 = vmul.f32 0.5, %v3378_v47  ;;  %v546_v52 = vadd.f32 0.5, %v534_v45  ;;  %v516_v54 = vmul.f32 0.5, %v3870_v46  ;;  %v3875_v60 = vadd.f32 %v3257_v48, %v2975_v17 }
 0x103   : > { %v3380_v50 = vpop.eup %3379  ;;  %v496_v51 = vpop.f32.mrf.mxu0 }
 0x104   : > { %v535_v53 = vmul.f32 0.5, %v3380_v50  ;;  %v3873_v56 = vadd.f32 %v2975_v17, %v496_v51  ;;  %v544_v57 = vadd.f32 0.5, %v532_v49  ;;  %v558_v62 = vmul.f32 %v546_v52, %v470_v19 }
 0x105   : > { %v3382_v55 = vpop.eup %3381  ;;  %3391 = vtanh.f32 %v516_v54  ;;  %v519_v12 = vmul.f32 0.5, %v3875_v60  ;;  %v518_v19 = vmul.f32 0.5, %v3878_v2 }
 0x106   : > { %v547_v58 = vadd.f32 0.5, %v535_v53  ;;  %v533_v59 = vmul.f32 0.5, %v3382_v55  ;;  %v517_v61 = vmul.f32 0.5, %v3873_v56  ;;  %v556_v4 = vmul.f32 %v544_v57, %v462_v22  ;;  %v3357_v22 = vld [vmem:[%s5104_s3 + $0x8] ss:$40 sps:$4 sm:$0xff]  }
 0x107   : > { %v3374_v57 = vld [vmem:[%s5104_s3 + $0x24] ss:$40 sps:$4 sm:$0xff]  }
 0x108   : > { %v559_v63 = vmul.f32 %v547_v58, %v473_v25  ;;  %v545_v0 = vadd.f32 0.5, %v533_v59  ;;  %3393 = vtanh.f32 %v517_v61  ;;  %v3365_v25 = vld [vmem:[%s5104_s3 + $0x6c] ss:$40 sps:$4 sm:$0xff]   ;;  %v3372_v58 = vld [vmem:[%s5104_s3 + $0x20] ss:$40 sps:$4 sm:$0xff]   ;;  %v5117_v59 = vlaneseq }
 0x109   : > { %v3384_v1 = vpop.eup %3383  ;;  %3395 = vtanh.f32 %v519_v12 }
 0x10a   : > { %v3883_v5 = vpack.c.bf16 %v559_v63, %v558_v62  ;;  %v557_v6 = vmul.f32 %v545_v0, %v465_v28  ;;  %v536_v7 = vmul.f32 0.5, %v3384_v1  ;;  %3397 = vtanh.f32 %v518_v19  ;;  %v4027_v62 = vld [vmem:[%s5105_s4] sm:$0xff] }
 0x10b   : > { %v3386_v10 = vpop.eup %3385 }
 0x10c   : > { %v3891_v11 = vpack.c.bf16 %v557_v6, %v556_v4  ;;  %3011 = vmatmul.mubr.msk.bf16.vlgmr.msra.gmra.mxu1 %vm408_vm1, %v3883_v5  ;;  %v548_v17 = vadd.f32 0.5, %v536_v7  ;;  %v539_v23 = vmul.f32 0.5, %v3386_v10 }
 0x10d   : > { %v3388_v15 = vpop.eup %3387  ;;  %965 = vmatpush1.bf16.msra.mxu1 %v3351_v3  ;;  %818 = vmatprep.mubr.bf16.mxu1 %v3694_v14 }
 0x10e   : > { %v537_v18 = vmul.f32 0.5, %v3388_v15  ;;  %3010 = vmatmul.mubr.msk.bf16.vlgmr.msra.gmra.mxu0 %vm408_vm1, %v3891_v11  ;;  %966 = vmatprep.subr.bf16.mxu1 %v3362_v8  ;;  %v3390_v21 = vpop.eup %3389  ;;  %v560_v27 = vmul.f32 %v548_v17, %v3858_v32  ;;  %v551_v29 = vadd.f32 0.5, %v539_v23 }
 0x10f   : > { %872 = vmatpush1.bf16.msra.mxu0 %v3354_v9  ;;  %891 = vmatprep.mubr.bf16.mxu0 %v3694_v14  ;;  %v538_v26 = vmul.f32 0.5, %v3390_v21 }
 0x110   : > { %v549_v24 = vadd.f32 0.5, %v537_v18  ;;  %873 = vmatprep.subr.bf16.mxu0 %v3359_v13  ;;  %v563_v38 = vmul.f32 %v551_v29, %v3863_v36 }
 0x111   : > { %967 = vmatpush1.bf16.msra.mxu1 %v3360_v16  ;;  %v550_v32 = vadd.f32 0.5, %v538_v26 }
 0x112   : > { %v561_v28 = vmul.f32 %v549_v24, %v3866_v39  ;;  %1150 = vmatprep.subr.bf16.mxu1 %v3368_v20  ;;  %v3392_v33 = vpop.eup %3391 }
 0x113   : > { %874 = vmatpush1.bf16.msra.mxu0 %v3357_v22  ;;  %v562_v41 = vmul.f32 %v550_v32, %v3860_v34  ;;  %v540_v42 = vmul.f32 0.5, %v3392_v33 }
 0x114   : > { %v3918_v30 = vpack.c.bf16 %v561_v28, %v560_v27  ;;  %1057 = vmatprep.subr.bf16.mxu0 %v3365_v25 }
 0x115   : > { %v3394_v37 = vpop.eup %3393  ;;  %v3937_v43 = vpack.c.bf16 %v563_v38, %v562_v41  ;;  %v552_v47 = vadd.f32 0.5, %v540_v42 }
 0x116   : > { %3012 = vmatmul.mubr.msk.bf16.gmra.mxu1 %vm408_vm1, %v3918_v30  ;;  %3016 = vmatmul.mubr.msk.bf16.vlgmr.msra.gmra.mxu0 %vm408_vm1, %v3891_v11  ;;  %v541_v39 = vmul.f32 0.5, %v3394_v37  ;;  %v3396_v45 = vpop.eup %3395 }
 0x117   : > { %828 = vmatprep.mubr.bf16.mxu1 %v3694_v14  ;;  %901 = vmatprep.mubr.bf16.mxu0 %v3694_v14  ;;  %v3398_v36 = vpop.eup %3397  ;;  %v543_v48 = vmul.f32 0.5, %v3396_v45  ;;  %v564_v50 = vmul.f32 %v552_v47, %v3870_v46  ;;  %v3366_v46 = vld [vmem:[%s5104_s3 + $0x70] ss:$40 sps:$4 sm:$0xff]  }
 0x118   : > { %1058 = vmatpush1.bf16.msra.mxu0 %v3363_v31  ;;  %v553_v44 = vadd.f32 0.5, %v541_v39  ;;  %v542_v49 = vmul.f32 0.5, %v3398_v36 }
 0x119   : > { %1059 = vmatprep.subr.bf16.mxu0 %v3371_v35  ;;  %v555_v51 = vadd.f32 0.5, %v543_v48 }
 0x11a   : > { %v565_v34 = vmul.f32 %v553_v44, %v3873_v56  ;;  %v554_v53 = vadd.f32 0.5, %v542_v49 }
 0x11b   : > { %v567_v54 = vmul.f32 %v555_v51, %v3875_v60  ;;  %v4019_v60 = vshrl.u32 %v5117_v59, 7 }
 0x11c   : > { %1060 = vmatpush1.bf16.msra.mxu0 %v3369_v40  ;;  %v572_v52 = vpack.c.bf16 %v565_v34, %v564_v50  ;;  %v566_v55 = vmul.f32 %v554_v53, %v3878_v2 }
 0x11d   : > { %5128 = vst [vmem:[#allocation8_spill] sm:$0xff] %v4019_v60  ;;  %v4022_v61 = vsub.s32 0, %v4019_v60  ;;  %v4030_v63 = vsub.s32 1, %v4019_v60  ;;  %v5116_v19 = vsub.s32 3, %v4019_v60 }
 0x11e   : > { %3013 = vmatmul.mubr.msk.bf16.gmra.mxu1 %vm408_vm1, %v3937_v43  ;;  %3017 = vmatmul.mubr.msk.bf16.gmra.mxu0 %vm408_vm1, %v3883_v5  ;;  %v573_v56 = vpack.c.bf16 %v567_v54, %v566_v55 }
 0x11f   : > { %838 = vmatprep.mubr.bf16.mxu1 %v3694_v14  ;;  %911 = vmatprep.mubr.bf16.mxu0 %v3694_v14  ;;  %5129 = vst [vmem:[#allocation9_spill] sm:$0xff] %v4022_v61  ;;  %5130 = vst [vmem:[#allocation10_spill] sm:$0xff] %v4030_v63  ;;  %v4038_v3 = vrot.slane %v4027_v62, %v4030_v63  ;;  %v4069_v31 = vrot.slane %v4027_v62, %v5116_v19 }
 0x126   : > { %3014 = vmatmul.mubr.msk.bf16.gmra.mxu1 %vm408_vm1, %v572_v52  ;;  %3018 = vmatmul.mubr.msk.bf16.gmra.mxu0 %vm408_vm1, %v3918_v30 }
 0x127   : > { %848 = vmatprep.mubr.bf16.mxu1 %v3694_v14  ;;  %921 = vmatprep.mubr.bf16.mxu0 %v3694_v14 }
 0x12e   : > { %3015 = vmatmul.mubr.msk.bf16.gmra.mxu1 %vm408_vm1, %v573_v56  ;;  %3019 = vmatmul.mubr.msk.bf16.gmra.mxu0 %vm408_vm1, %v3937_v43 }
 0x12f   : > { %931 = vmatprep.mubr.bf16.mxu0 %v3694_v14  ;;  %984 = vmatprep.mubr.bf16.mxu1 %v3694_v14 }
 0x136   : > { %3020 = vmatmul.mubr.msk.bf16.gmra.mxu0 %vm408_vm1, %v572_v52  ;;  %3022 = vmatmul.mubr.msk.bf16.vlgmr.msra.gmra.mxu1 %vm408_vm1, %v3891_v11 }
 0x137   : > { %1151 = vmatpush1.bf16.msra.mxu1 %v3366_v46  ;;  %941 = vmatprep.mubr.bf16.mxu0 %v3694_v14  ;;  %v5111_v46 = vsub.s32 4, %v4019_v60 }
 0x138   : > { %994 = vmatprep.mubr.bf16.mxu1 %v3694_v14  ;;  %1152 = vmatprep.subr.bf16.mxu1 %v3374_v57 }
 0x13b   : > { %1153 = vmatpush1.bf16.msra.mxu1 %v3372_v58 }
 0x13e   : > { %3021 = vmatmul.mubr.msk.bf16.gmra.mxu0 %vm408_vm1, %v573_v56  ;;  %3023 = vmatmul.mubr.msk.bf16.gmra.mxu1 %vm408_vm1, %v3883_v5 }
 0x13f   : > { %1004 = vmatprep.mubr.bf16.mxu1 %v3694_v14  ;;  %1077 = vmatprep.mubr.bf16.mxu0 %v3694_v14 }
 0x146   : > { %3024 = vmatmul.mubr.msk.bf16.gmra.mxu1 %vm408_vm1, %v3918_v30  ;;  %3028 = vmatmul.mubr.msk.bf16.vlgmr.msra.gmra.mxu0 %vm408_vm1, %v3891_v11 }
 0x147   : > { %1014 = vmatprep.mubr.bf16.mxu1 %v3694_v14  ;;  %1087 = vmatprep.mubr.bf16.mxu0 %v3694_v14 }
 0x14e   : > { %3025 = vmatmul.mubr.msk.bf16.gmra.mxu1 %vm408_vm1, %v3937_v43  ;;  %3029 = vmatmul.mubr.msk.bf16.gmra.mxu0 %vm408_vm1, %v3883_v5 }
 0x14f   : > { %1024 = vmatprep.mubr.bf16.mxu1 %v3694_v14  ;;  %1097 = vmatprep.mubr.bf16.mxu0 %v3694_v14 }
 0x156   : > { %3026 = vmatmul.mubr.msk.bf16.gmra.mxu1 %vm408_vm1, %v572_v52  ;;  %3030 = vmatmul.mubr.msk.bf16.gmra.mxu0 %vm408_vm1, %v3918_v30 }
 0x157   : > { %1034 = vmatprep.mubr.bf16.mxu1 %v3694_v14  ;;  %1107 = vmatprep.mubr.bf16.mxu0 %v3694_v14 }
 0x15e   : > { %3027 = vmatmul.mubr.msk.bf16.gmra.mxu1 %vm408_vm1, %v573_v56  ;;  %3031 = vmatmul.mubr.msk.bf16.gmra.mxu0 %vm408_vm1, %v3937_v43 }
 0x15f   : > { %1117 = vmatprep.mubr.bf16.mxu0 %v3694_v14  ;;  %1170 = vmatprep.mubr.bf16.mxu1 %v3694_v14 }
 0x166   : > { %3032 = vmatmul.mubr.msk.bf16.gmra.mxu0 %vm408_vm1, %v572_v52  ;;  %3034 = vmatmul.mubr.msk.bf16.vlgmr.msra.gmra.mxu1 %vm408_vm1, %v3891_v11  ;;  %v5115_v11 = vsub.s32 2, %v4019_v60 }
 0x167   : > { %1127 = vmatprep.mubr.bf16.mxu0 %v3694_v14  ;;  %1180 = vmatprep.mubr.bf16.mxu1 %v3694_v14 }
 0x168   : > { %v4060_v25 = vrot.slane %v4027_v62, %v5115_v11 }
 0x16e   : > { %3033 = vmatmul.mubr.msk.bf16.gmra.mxu0 %vm408_vm1, %v573_v56  ;;  %3035 = vmatmul.mubr.msk.bf16.gmra.mxu1 %vm408_vm1, %v3883_v5 }
 0x16f   : > { %1190 = vmatprep.mubr.bf16.mxu1 %v3694_v14 }
 0x176   : > { %3036 = vmatmul.mubr.msk.bf16.gmra.mxu1 %vm408_vm1, %v3918_v30 }
 0x177   : > { %1200 = vmatprep.mubr.bf16.mxu1 %v3694_v14 }
 0x17e   : > { %3037 = vmatmul.mubr.msk.bf16.gmra.mxu1 %vm408_vm1, %v3937_v43 }
 0x17f   : > { %1210 = vmatprep.mubr.bf16.mxu1 %v3694_v14 }
 0x186   : > { %3038 = vmatmul.mubr.msk.bf16.gmra.mxu1 %vm408_vm1, %v572_v52 }
 0x187   : > { %1220 = vmatprep.mubr.bf16.mxu1 %v3694_v14  ;;  %v4034_v14 = vrot.slane %v4027_v62, %v4022_v61 }
 0x18e   : > { %3039 = vmatmul.mubr.msk.bf16.gmra.mxu1 %vm408_vm1, %v573_v56 }
 0x1cc   : > { %v810_v0 = vpop.f32.mrf.mxu1 }
 0x1cd   : > { %v811_v6 = vadd.f32 %v810_v0, %v4034_v14 }
 0x1ce   : > { %v800_v1 = vpop.f32.mrf.mxu0  ;;  %v812_v2 = vpop.f32.mrf.mxu1 }
 0x1cf   : > { %v801_v8 = vadd.f32 %v800_v1, %v4034_v14  ;;  %v813_v12 = vadd.f32 %v812_v2, %v4038_v3 }
 0x1d0   : > { %v802_v4 = vpop.f32.mrf.mxu0  ;;  %v814_v5 = vpop.f32.mrf.mxu1 }
 0x1d1   : > { %v815_v7 = vadd.f32 %v814_v5, %v4034_v14  ;;  %v803_v17 = vadd.f32 %v802_v4, %v4038_v3  ;;  %v5112_v4 = vsub.s32 5, %v4019_v60 }
 0x1d2   : > { %v804_v9 = vpop.f32.mrf.mxu0  ;;  %v816_v10 = vpop.f32.mrf.mxu1 }
 0x1d3   : > { %v4045_v13 = vpack.c.bf16 %v815_v7, %v811_v6  ;;  %v805_v15 = vadd.f32 %v804_v9, %v4034_v14  ;;  %v817_v16 = vadd.f32 %v816_v10, %v4038_v3 }
 0x1d4   : > { %v806_v18 = vpop.f32.mrf.mxu0 }
 0x1d5   : > { %v1301_v20 = vmul.bf16 1056980736, %v4045_v13  ;;  %v4052_v21 = vpack.c.bf16 %v805_v15, %v801_v8  ;;  %v4054_v22 = vpack.c.bf16 %v817_v16, %v813_v12  ;;  %v807_v23 = vadd.f32 %v806_v18, %v4038_v3 }
 0x1d6   : > { %v820_v24 = vpop.f32.mrf.mxu1  ;;  %v893_v26 = vpop.f32.mrf.mxu0  ;;  %v4103_v15 = vrot.slane %v4027_v62, %v5111_v46 }
 0x1d7   : > { %3399 = vtanh.bf16 %v1301_v20  ;;  %v1291_v27 = vmul.bf16 1056980736, %v4052_v21  ;;  %v1302_v28 = vmul.bf16 1056980736, %v4054_v22  ;;  %v4064_v29 = vpack.c.bf16 %v807_v23, %v803_v17 }
 0x1d8   : > { %v822_v30 = vpop.f32.mrf.mxu1  ;;  %v895_v33 = vpop.f32.mrf.mxu0  ;;  %v821_v37 = vadd.f32 %v820_v24, %v4034_v14  ;;  %v894_v39 = vadd.f32 %v893_v26, %v4060_v25 }
 0x1d9   : > { %3401 = vtanh.bf16 %v1291_v27  ;;  %v1292_v35 = vmul.bf16 1056980736, %v4064_v29  ;;  %v823_v42 = vadd.f32 %v822_v30, %v4038_v3  ;;  %v896_v43 = vadd.f32 %v895_v33, %v4069_v31 }
 0x1da   : > { %3403 = vtanh.bf16 %v1302_v28  ;;  %v824_v32 = vpop.f32.mrf.mxu1  ;;  %v897_v38 = vpop.f32.mrf.mxu0  ;;  %v3695_v28 = vmov 1966171168   ;;  %v4116_v33 = vrot.slane %v4027_v62, %v5112_v4 }
 0x1db   : > { %3405 = vtanh.bf16 %v1292_v35  ;;  %v825_v40 = vadd.f32 %v824_v32, %v4034_v14  ;;  %v898_v41 = vadd.f32 %v897_v38, %v4060_v25  ;;  %v4111_v30 = vunpack.c.l.s4 %v3695_v28 }
 0x1dc   : > { %v826_v44 = vpop.f32.mrf.mxu1  ;;  %v899_v45 = vpop.f32.mrf.mxu0  ;;  %v5113_v35 = vsub.s32 6, %v4019_v60 }
 0x1dd   : > { %v4078_v47 = vpack.c.bf16 %v825_v40, %v821_v37  ;;  %v4080_v36 = vpack.c.bf16 %v898_v41, %v894_v39  ;;  %v827_v48 = vadd.f32 %v826_v44, %v4038_v3  ;;  %v900_v34 = vadd.f32 %v899_v45, %v4069_v31 }
 0x1de   : > { %v830_v49 = vpop.f32.mrf.mxu1  ;;  %v903_v50 = vpop.f32.mrf.mxu0 }
 0x1df   : > { %v1311_v51 = vmul.bf16 1056980736, %v4078_v47  ;;  %v1293_v52 = vmul.bf16 1056980736, %v4080_v36  ;;  %v4086_v53 = vpack.c.bf16 %v827_v48, %v823_v42  ;;  %v4088_v54 = vpack.c.bf16 %v900_v34, %v896_v43 }
 0x1e0   : > { %v832_v55 = vpop.f32.mrf.mxu1  ;;  %v905_v56 = vpop.f32.mrf.mxu0  ;;  %v831_v0 = vadd.f32 %v830_v49, %v4034_v14  ;;  %v904_v5 = vadd.f32 %v903_v50, %v4060_v25 }
 0x1e1   : > { %3407 = vtanh.bf16 %v1311_v51  ;;  %v1312_v57 = vmul.bf16 1056980736, %v4086_v53  ;;  %v1294_v58 = vmul.bf16 1056980736, %v4088_v54  ;;  %v833_v8 = vadd.f32 %v832_v55, %v4038_v3 }
 0x1e2   : > { %3409 = vtanh.bf16 %v1293_v52  ;;  %v834_v1 = vpop.f32.mrf.mxu1  ;;  %v907_v2 = vpop.f32.mrf.mxu0  ;;  %v906_v9 = vadd.f32 %v905_v56, %v4069_v31 }
 0x1e3   : > { %3411 = vtanh.bf16 %v1312_v57  ;;  %v835_v6 = vadd.f32 %v834_v1, %v4034_v14  ;;  %v908_v7 = vadd.f32 %v907_v2, %v4060_v25 }
 0x1e4   : > { %3413 = vtanh.bf16 %v1294_v58  ;;  %v836_v10 = vpop.f32.mrf.mxu1  ;;  %v909_v12 = vpop.f32.mrf.mxu0 }
 0x1e5   : > { %v3400_v16 = vpop.eup %3399  ;;  %v4105_v17 = vpack.c.bf16 %v835_v6, %v831_v0  ;;  %v4107_v18 = vpack.c.bf16 %v908_v7, %v904_v5  ;;  %v837_v20 = vadd.f32 %v836_v10, %v4038_v3  ;;  %v910_v23 = vadd.f32 %v909_v12, %v4069_v31 }
 0x1e6   : > { %v1421_v24 = vmul.bf16 1056980736, %v3400_v16  ;;  %v840_v26 = vpop.f32.mrf.mxu1  ;;  %v913_v27 = vpop.f32.mrf.mxu0 }
 0x1e7   : > { %v3402_v37 = vpop.eup %3401  ;;  %v1321_v32 = vmul.bf16 1056980736, %v4105_v17  ;;  %v1303_v38 = vmul.bf16 1056980736, %v4107_v18  ;;  %v4121_v39 = vpack.c.bf16 %v837_v20, %v833_v8  ;;  %v4123_v40 = vpack.c.bf16 %v910_v23, %v906_v9 }
 0x1e8   : > { %v3404_v41 = vpop.eup %3403  ;;  %v1481_v42 = vadd.bf16 1056980736, %v1421_v24  ;;  %v1411_v43 = vmul.bf16 1056980736, %v3402_v37  ;;  %v841_v44 = vadd.f32 %v840_v26, %v4034_v14  ;;  %v914_v45 = vadd.f32 %v913_v27, %v4060_v25  ;;  %v842_v48 = vpop.f32.mrf.mxu1 }
 0x1e9   : > { %v915_v34 = vpop.f32.mrf.mxu0  ;;  %v3406_v49 = vpop.eup %3405  ;;  %v1422_v50 = vmul.bf16 1056980736, %v3404_v41  ;;  %3415 = vtanh.bf16 %v1321_v32  ;;  %v1322_v51 = vmul.bf16 1056980736, %v4121_v39  ;;  %v1304_v52 = vmul.bf16 1056980736, %v4123_v40 }
 0x1ea   : > { %v1541_v55 = vmul.bf16 %v1481_v42, %v4045_v13  ;;  %v1471_v56 = vadd.bf16 1056980736, %v1411_v43  ;;  %v1412_v57 = vmul.bf16 1056980736, %v3406_v49  ;;  %3417 = vtanh.bf16 %v1303_v38  ;;  %v844_v58 = vpop.f32.mrf.mxu1 }
 0x1eb   : > { %v917_v0 = vpop.f32.mrf.mxu0  ;;  %v1482_v1 = vadd.bf16 1056980736, %v1422_v50  ;;  %3419 = vtanh.bf16 %v1322_v51  ;;  %v843_v2 = vadd.f32 %v842_v48, %v4038_v3  ;;  %v4132_v5 = vadd.f32 %v915_v34, %v4069_v31 }
 0x1ec   : > { %v1613_v6 = vunpack.c.l.bf16 %v1541_v55  ;;  %v1623_v7 = vunpack.c.h.bf16 %v1541_v55  ;;  %v1531_v8 = vmul.bf16 %v1471_v56, %v4052_v21  ;;  %v1472_v9 = vadd.bf16 1056980736, %v1412_v57  ;;  %v846_v10 = vpop.f32.mrf.mxu1 }
 0x1ed   : > { %v919_v12 = vpop.f32.mrf.mxu0  ;;  %v1542_v13 = vmul.bf16 %v1482_v1, %v4054_v22  ;;  %3421 = vtanh.bf16 %v1304_v52  ;;  %v845_v16 = vadd.f32 %v844_v58, %v4034_v14  ;;  %v918_v20 = vadd.f32 %v917_v0, %v4060_v25 }
 0x1ee   : > { %v1593_v23 = vunpack.c.l.bf16 %v1531_v8  ;;  %v1603_v24 = vunpack.c.h.bf16 %v1531_v8  ;;  %v1532_v26 = vmul.bf16 %v1472_v9, %v4064_v29  ;;  %v847_v27 = vadd.f32 %v846_v10, %v4038_v3  ;;  %v4140_v28 = vpop.f32.mrf.mxu1 }
 0x1ef   : > { %v4142_v37 = vpop.f32.mrf.mxu0  ;;  %v3408_v21 = vpop.eup %3407  ;;  %v1614_v32 = vunpack.c.l.bf16 %v1542_v13  ;;  %v1624_v38 = vunpack.c.h.bf16 %v1542_v13  ;;  %v4144_v41 = vpack.c.bf16 %v845_v16, %v841_v44  ;;  %v4146_v22 = vpack.c.bf16 %v918_v20, %v914_v45 }
 0x1f0   : > { %v3410_v42 = vpop.eup %3409  ;;  %v1713_v43 = vadd.f32 %v1603_v24, %v1593_v23  ;;  %v1594_v48 = vunpack.c.l.bf16 %v1532_v26  ;;  %v1604_v34 = vunpack.c.h.bf16 %v1532_v26  ;;  %v1431_v49 = vmul.bf16 1056980736, %v3408_v21  ;;  %v4148_v50 = vpop.f32.mrf.mxu1 }
 0x1f1   : > { %v4150_v29 = vpop.f32.mrf.mxu0  ;;  %v3412_v51 = vpop.eup %3411  ;;  %v1413_v52 = vmul.bf16 1056980736, %v3410_v42  ;;  %v1331_v55 = vmul.bf16 1056980736, %v4144_v41  ;;  %v1313_v56 = vmul.bf16 1056980736, %v4146_v22  ;;  %v4154_v57 = vpack.c.bf16 %v847_v27, %v843_v2 }
 0x1f2   : > { %v3414_v44 = vpop.eup %3413  ;;  %v1714_v45 = vadd.f32 %v1713_v43, %v1613_v6  ;;  %v1730_v58 = vadd.f32 %v1604_v34, %v1594_v48  ;;  %v1491_v0 = vadd.bf16 1056980736, %v1431_v49  ;;  %v1432_v1 = vmul.bf16 1056980736, %v3412_v51  ;;  %v4156_v8 = vpop.f32.mrf.mxu1 }
 0x1f3   : > { %v4158_v9 = vpop.f32.mrf.mxu0  ;;  %v1473_v10 = vadd.bf16 1056980736, %v1413_v52  ;;  %v1414_v13 = vmul.bf16 1056980736, %v3414_v44  ;;  %3423 = vtanh.bf16 %v1331_v55  ;;  %v1332_v16 = vmul.bf16 1056980736, %v4154_v57 }
 0x1f4   : > { %v1731_v20 = vadd.f32 %v1730_v58, %v1614_v32  ;;  %v1551_v23 = vmul.bf16 %v1491_v0, %v4078_v47  ;;  %v1715_v24 = vadd.f32 %v1714_v45, %v1623_v7  ;;  %v1492_v2 = vadd.bf16 1056980736, %v1432_v1  ;;  %v4162_v26 = vpop.f32.mrf.mxu1 }
 0x1f5   : > { %v4164_v6 = vpop.f32.mrf.mxu0  ;;  %v1533_v27 = vmul.bf16 %v1473_v10, %v4080_v36  ;;  %v1474_v21 = vadd.bf16 1056980736, %v1414_v13  ;;  %3425 = vtanh.bf16 %v1313_v56  ;;  %v920_v42 = vadd.f32 %v919_v12, %v4069_v31 }
 0x1f6   : > { %v1633_v43 = vunpack.c.l.bf16 %v1551_v23  ;;  %v1643_v48 = vunpack.c.h.bf16 %v1551_v23  ;;  %v1552_v34 = vmul.bf16 %v1492_v2, %v4086_v53  ;;  %v1732_v49 = vadd.f32 %v1731_v20, %v1624_v38  ;;  %v4171_v47 = vpop.f32.mrf.mxu1 }
 0x1f7   : > { %v4169_v32 = vpop.f32.mrf.mxu0  ;;  %v3416_v7 = vpop.eup %3415  ;;  %v1595_v51 = vunpack.c.l.bf16 %v1533_v27  ;;  %v1605_v52 = vunpack.c.h.bf16 %v1533_v27  ;;  %v1534_v55 = vmul.bf16 %v1474_v21, %v4088_v54  ;;  %3427 = vtanh.bf16 %v1332_v16 }
 0x1f8   : > { %v3418_v36 = vpop.eup %3417  ;;  %v1716_v44 = vadd.f32 %v1715_v24, %v1633_v43  ;;  %v1634_v56 = vunpack.c.l.bf16 %v1552_v34  ;;  %v1644_v45 = vunpack.c.h.bf16 %v1552_v34  ;;  %v1441_v12 = vmul.bf16 1056980736, %v3416_v7  ;;  %v4176_v0 = vpop.f32.mrf.mxu1 }
 0x1f9   : > { %v4174_v58 = vpop.f32.mrf.mxu0  ;;  %v3420_v53 = vpop.eup %3419  ;;  %v1747_v38 = vadd.f32 %v1605_v52, %v1595_v51  ;;  %v1596_v1 = vunpack.c.l.bf16 %v1534_v55  ;;  %v1606_v10 = vunpack.c.h.bf16 %v1534_v55  ;;  %v1423_v13 = vmul.bf16 1056980736, %v3418_v36 }
 0x1fa   : > { %v1717_v20 = vadd.f32 %v1716_v44, %v1643_v48  ;;  %v1733_v23 = vadd.f32 %v1732_v49, %v1634_v56  ;;  %v1501_v2 = vadd.bf16 1056980736, %v1441_v12  ;;  %v1442_v27 = vmul.bf16 1056980736, %v3420_v53  ;;  %v4180_v16 = vpop.f32.mrf.mxu1 }
 0x1fb   : > { %v4178_v54 = vpop.f32.mrf.mxu0  ;;  %v3422_v24 = vpop.eup %3421  ;;  %v1764_v21 = vadd.f32 %v1606_v10, %v1596_v1  ;;  %v1483_v43 = vadd.bf16 1056980736, %v1423_v13  ;;  %v4183_v34 = vpack.c.bf16 %v920_v42, %v4132_v5  ;;  %v851_v7 = vadd.f32 %v4140_v28, %v4034_v14 }
 0x1fc   : > { %v1734_v51 = vadd.f32 %v1733_v23, %v1644_v45  ;;  %v1561_v52 = vmul.bf16 %v1501_v2, %v4105_v17  ;;  %v1502_v48 = vadd.bf16 1056980736, %v1442_v27  ;;  %v1424_v49 = vmul.bf16 1056980736, %v3422_v24  ;;  %v4190_v36 = vpop.f32.mrf.mxu1 }
 0x1fd   : > { %v4188_v55 = vpop.f32.mrf.mxu0  ;;  %v1543_v44 = vmul.bf16 %v1483_v43, %v4107_v18  ;;  %v1314_v56 = vmul.bf16 1056980736, %v4183_v34  ;;  %v924_v5 = vadd.f32 %v4142_v37, %v4060_v25  ;;  %v853_v42 = vadd.f32 %v4148_v50, %v4038_v3 }
 0x1fe   : > { %v1653_v28 = vunpack.c.l.bf16 %v1561_v52  ;;  %v1663_v45 = vunpack.c.h.bf16 %v1561_v52  ;;  %v1562_v17 = vmul.bf16 %v1502_v48, %v4121_v39  ;;  %v1484_v12 = vadd.bf16 1056980736, %v1424_v49  ;;  %v4201_v1 = vpop.f32.mrf.mxu1 }
 0x1ff   : > { %v4199_v53 = vpop.f32.mrf.mxu0  ;;  %v1615_v10 = vunpack.c.l.bf16 %v1543_v44  ;;  %v1625_v13 = vunpack.c.h.bf16 %v1543_v44  ;;  %3429 = vtanh.bf16 %v1314_v56  ;;  %v926_v18 = vadd.f32 %v4150_v29, %v4069_v31 }
 0x200   : > { %v1718_v23 = vadd.f32 %v1717_v20, %v1653_v28  ;;  %v1654_v37 = vunpack.c.l.bf16 %v1562_v17  ;;  %v1664_v2 = vunpack.c.h.bf16 %v1562_v17  ;;  %v1544_v50 = vmul.bf16 %v1484_v12, %v4123_v40  ;;  %v4208_v24 = vpop.f32.mrf.mxu1 }
 0x201   : > { %v4206_v27 = vpop.f32.mrf.mxu0  ;;  %v3424_v39 = vpop.eup %3423  ;;  %v1748_v43 = vadd.f32 %v1747_v38, %v1615_v10  ;;  %v855_v52 = vadd.f32 %v4156_v8, %v4034_v14  ;;  %v928_v48 = vadd.f32 %v4158_v9, %v4060_v25  ;;  %v857_v29 = vadd.f32 %v4162_v26, %v4038_v3 }
 0x202   : > { %v1719_v20 = vadd.f32 %v1718_v23, %v1663_v45  ;;  %v1735_v49 = vadd.f32 %v1734_v51, %v1654_v37  ;;  %v1616_v44 = vunpack.c.l.bf16 %v1544_v50  ;;  %v1626_v56 = vunpack.c.h.bf16 %v1544_v50  ;;  %v4218_v28 = vpop.f32.mrf.mxu1 }
 0x203   : > { %v4216_v40 = vpop.f32.mrf.mxu0  ;;  %v3426_v17 = vpop.eup %3425  ;;  %v1749_v12 = vadd.f32 %v1748_v43, %v1625_v13  ;;  %v1451_v38 = vmul.bf16 1056980736, %v3424_v39  ;;  %v4220_v10 = vpack.c.bf16 %v855_v52, %v851_v7  ;;  %v4222_v14 = vpack.c.bf16 %v928_v48, %v924_v5 }
 0x204   : > { %v1736_v8 = vadd.f32 %v1735_v49, %v1664_v2  ;;  %v1765_v9 = vadd.f32 %v1764_v21, %v1616_v44  ;;  %v1433_v46 = vmul.bf16 1056980736, %v3426_v17  ;;  %v4224_v4 = vpack.c.bf16 %v857_v29, %v853_v42  ;;  %v4228_v26 = vpop.f32.mrf.mxu1 }
 0x205   : > { %v4226_v3 = vpop.f32.mrf.mxu0  ;;  %v3428_v51 = vpop.eup %3427  ;;  %v1511_v45 = vadd.bf16 1056980736, %v1451_v38  ;;  %v1341_v23 = vmul.bf16 1056980736, %v4220_v10  ;;  %v1323_v13 = vmul.bf16 1056980736, %v4222_v14  ;;  %v930_v7 = vadd.f32 %v4164_v6, %v4069_v31 }
 0x206   : > { %v4234_v5 = vadd.f32 %v1765_v9, %v1626_v56  ;;  %v1493_v37 = vadd.bf16 1056980736, %v1433_v46  ;;  %v1452_v21 = vmul.bf16 1056980736, %v3428_v51  ;;  %v1342_v42 = vmul.bf16 1056980736, %v4224_v4  ;;  %v4237_v2 = vpop.f32.mrf.mxu1 }
 0x207   : > { %v4239_v50 = vpop.f32.mrf.mxu0  ;;  %v1571_v39 = vmul.bf16 %v1511_v45, %v4144_v41  ;;  %3431 = vtanh.bf16 %v1341_v23  ;;  %v4242_v43 = vpack.c.bf16 %v930_v7, %v926_v18  ;;  %v934_v52 = vadd.f32 %v4169_v32, %v4060_v25 }
 0x208   : > { %v1553_v6 = vmul.bf16 %v1493_v37, %v4146_v22  ;;  %v1512_v48 = vadd.bf16 1056980736, %v1452_v21  ;;  %3433 = vtanh.bf16 %v1323_v13  ;;  %v987_v46 = vadd.f32 %v4171_v47, %v4103_v15  ;;  %v4249_v29 = vpop.f32.mrf.mxu1 }
 0x209   : > { %v4251_v49 = vpop.f32.mrf.mxu0  ;;  %v1673_v44 = vunpack.c.l.bf16 %v1571_v39  ;;  %v1683_v56 = vunpack.c.h.bf16 %v1571_v39  ;;  %3435 = vtanh.bf16 %v1342_v42  ;;  %v1324_v41 = vmul.bf16 1056980736, %v4242_v43 }
 0x20a   : > { %v1635_v18 = vunpack.c.l.bf16 %v1553_v6  ;;  %v1645_v17 = vunpack.c.h.bf16 %v1553_v6  ;;  %v1572_v32 = vmul.bf16 %v1512_v48, %v4154_v57  ;;  %v936_v22 = vadd.f32 %v4174_v58, %v4069_v31  ;;  %v4257_v38 = vpop.f32.mrf.mxu1 }
 0x20b   : > { %v4259_v9 = vpop.f32.mrf.mxu0  ;;  %v1720_v47 = vadd.f32 %v1719_v20, %v1673_v44  ;;  %3437 = vtanh.bf16 %v1324_v41  ;;  %v989_v51 = vadd.f32 %v4176_v0, %v4116_v33  ;;  %v938_v45 = vadd.f32 %v4178_v54, %v4060_v25 }
 0x20c   : > { %v1750_v23 = vadd.f32 %v1749_v12, %v1635_v18  ;;  %v1674_v13 = vunpack.c.l.bf16 %v1572_v32  ;;  %v1684_v7 = vunpack.c.h.bf16 %v1572_v32  ;;  %v991_v57 = vadd.f32 %v4180_v16, %v4103_v15  ;;  %v4267_v37 = vpop.f32.mrf.mxu1 }
 0x20d   : > { %v3430_v58 = vpop.eup %3429  ;;  %v4269_v21 = vadd.f32 %v1720_v47, %v1683_v56  ;;  %v4271_v42 = vpack.c.bf16 %v938_v45, %v934_v52  ;;  %v940_v20 = vadd.f32 %v4188_v55, %v4069_v31  ;;  %v993_v0 = vadd.f32 %v4190_v36, %v4116_v33  ;;  %v4281_v16 = vpop.f32.mrf.mxu0 }
 0x20e   : > { %v4277_v54 = vadd.f32 %v1750_v23, %v1645_v17  ;;  %v1737_v12 = vadd.f32 %v1736_v8, %v1674_v13  ;;  %v1434_v39 = vmul.bf16 1056980736, %v3430_v58  ;;  %v4279_v6 = vpack.c.bf16 %v991_v57, %v987_v46  ;;  %v4283_v48 = vpop.f32.mrf.mxu1 }
 0x20f   : > { %v1333_v44 = vmul.bf16 1056980736, %v4271_v42  ;;  %v4286_v52 = vpack.c.bf16 %v940_v20, %v936_v22  ;;  %v4288_v56 = vpack.c.bf16 %v993_v0, %v989_v51  ;;  %v944_v55 = vadd.f32 %v4199_v53, %v4060_v25 }
 0x210   : > { %v4292_v36 = vadd.f32 %v1737_v12, %v1684_v7  ;;  %v1494_v41 = vadd.bf16 1056980736, %v1434_v39  ;;  %v1295_v8 = vmul.bf16 1056980736, %v4279_v6  ;;  %v997_v46 = vadd.f32 %v4201_v1, %v4103_v15  ;;  %v4297_v18 = vpop.f32.mrf.mxu1  ;;  %v4308_v1 = vpop.f32.mrf.mxu0 }
 0x211   : > { %3439 = vtanh.bf16 %v1333_v44  ;;  %v1334_v17 = vmul.bf16 1056980736, %v4286_v52  ;;  %v1296_v32 = vmul.bf16 1056980736, %v4288_v56  ;;  %v946_v22 = vadd.f32 %v4206_v27, %v4069_v31 }
 0x212   : > { %v1554_v53 = vmul.bf16 %v1494_v41, %v4183_v34  ;;  %3441 = vtanh.bf16 %v1295_v8  ;;  %v999_v47 = vadd.f32 %v4208_v24, %v4116_v33  ;;  %v948_v51 = vadd.f32 %v4216_v40, %v4060_v25  ;;  %v4310_v45 = vpop.f32.mrf.mxu1  ;;  %v4336_v39 = vpop.f32.mrf.mxu0 }
 0x213   : > { %3443 = vtanh.bf16 %v1334_v17  ;;  %v1001_v23 = vadd.f32 %v4218_v28, %v4103_v15  ;;  %v950_v27 = vadd.f32 %v4226_v3, %v4069_v31  ;;  %v1003_v34 = vadd.f32 %v4228_v26, %v4116_v33 }
 0x214   : > { %v1636_v13 = vunpack.c.l.bf16 %v1554_v53  ;;  %3445 = vtanh.bf16 %v1296_v32  ;;  %v4318_v24 = vpack.c.bf16 %v948_v51, %v944_v55  ;;  %v4323_v25 = vrot.slane %v4027_v62, %v5113_v35  ;;  %v4325_v40 = vpop.f32.mrf.mxu1 }
 0x215   : > { %v3432_v7 = vpop.eup %3431  ;;  %v4327_v57 = vpack.c.bf16 %v1001_v23, %v997_v46  ;;  %v4329_v28 = vpack.c.bf16 %v950_v27, %v946_v22  ;;  %v4331_v31 = vpack.c.bf16 %v1003_v34, %v999_v47  ;;  %v5114_v3 = vsub.s32 7, %v4019_v60 }
 0x216   : > { %v3434_v26 = vpop.eup %3433  ;;  %v1646_v58 = vunpack.c.h.bf16 %v1554_v53  ;;  %v1767_v20 = vadd.f32 %v4234_v5, %v1636_v13  ;;  %v1461_v0 = vmul.bf16 1056980736, %v3432_v7  ;;  %v1343_v12 = vmul.bf16 1056980736, %v4318_v24  ;;  %v4338_v44 = vpop.f32.mrf.mxu1 }
 0x217   : > { %v3436_v55 = vpop.eup %3435  ;;  %v1443_v41 = vmul.bf16 1056980736, %v3434_v26  ;;  %v1899_v8 = vunpack.c.0.s8 %v4111_v30  ;;  %v1305_v46 = vmul.bf16 1056980736, %v4327_v57  ;;  %v1344_v17 = vmul.bf16 1056980736, %v4329_v28  ;;  %v4353_v26 = vpop.f32.mrf.mxu0 }
 0x218   : > { %v4343_v32 = vadd.f32 %v1767_v20, %v1646_v58  ;;  %v1521_v22 = vadd.bf16 1056980736, %v1461_v0  ;;  %v1462_v53 = vmul.bf16 1056980736, %v3436_v55  ;;  %3447 = vtanh.bf16 %v1343_v12  ;;  %v4345_v5 = vpop.f32.mrf.mxu1 }
 0x219   : > { %v3438_v47 = vpop.eup %3437  ;;  %v1503_v51 = vadd.bf16 1056980736, %v1443_v41  ;;  %3449 = vtanh.bf16 %v1305_v46  ;;  %v1306_v23 = vmul.bf16 1056980736, %v4331_v31  ;;  %v1007_v27 = vadd.f32 %v4237_v2, %v4103_v15 }
 0x21a   : > { %v1581_v30 = vmul.bf16 %v1521_v22, %v4220_v10  ;;  %v1522_v34 = vadd.bf16 1056980736, %v1462_v53  ;;  %v1444_v13 = vmul.bf16 1056980736, %v3438_v47  ;;  %v1080_v7 = vadd.f32 %v4239_v50, %v4323_v25  ;;  %v4355_v58 = vpop.f32.mrf.mxu1 }
 0x21b   : > { %v4358_v20 = vmul.bf16 %v1503_v51, %v4222_v14  ;;  %3451 = vtanh.bf16 %v1344_v17  ;;  %v1011_v0 = vadd.f32 %v4257_v38, %v4103_v15  ;;  %v1084_v2 = vadd.f32 %v4259_v9, %v4323_v25  ;;  %v4374_v9 = vpop.f32.mrf.mxu0 }
 0x21c   : > { %v1693_v10 = vunpack.c.l.bf16 %v1581_v30  ;;  %v1582_v12 = vmul.bf16 %v1522_v34, %v4224_v4  ;;  %v1504_v55 = vadd.bf16 1056980736, %v1444_v13  ;;  %3453 = vtanh.bf16 %v1306_v23  ;;  %v4365_v50 = vpop.f32.mrf.mxu1 }
 0x21d   : > { %v1703_v41 = vunpack.c.h.bf16 %v1581_v30  ;;  %v4367_v46 = vpack.c.bf16 %v1011_v0, %v1007_v27  ;;  %v4369_v22 = vpack.c.bf16 %v1084_v2, %v1080_v7  ;;  %v1655_v17 = vunpack.c.l.bf16 %v4358_v20 }
 0x21e   : > { %v1722_v14 = vadd.f32 %v4269_v21, %v1693_v10  ;;  %v1694_v38 = vunpack.c.l.bf16 %v1582_v12  ;;  %v1564_v53 = vmul.bf16 %v1504_v55, %v4242_v43  ;;  %v4376_v47 = vpop.f32.mrf.mxu1  ;;  %v4379_v51 = vsub.s32 %v1899_v8, %v4019_v60 }
 0x21f   : > { %v3440_v4 = vpop.eup %3439  ;;  %v4384_v23 = vrot.slane %v4027_v62, %v5114_v3  ;;  %v1315_v21 = vmul.bf16 1056980736, %v4367_v46  ;;  %v1297_v27 = vmul.bf16 1056980736, %v4369_v22  ;;  %v1704_v43 = vunpack.c.h.bf16 %v1582_v12 }
 0x220   : > { %v3442_v30 = vpop.eup %3441  ;;  %v1723_v34 = vadd.f32 %v1722_v14, %v1703_v41  ;;  %v1739_v13 = vadd.f32 %v4292_v36, %v1694_v38  ;;  %v1009_v7 = vadd.f32 %v4249_v29, %v4116_v33  ;;  %v4391_v0 = vpop.f32.mrf.mxu1  ;;  %v1656_v2 = vunpack.c.l.bf16 %v1564_v53 }
 0x221   : > { %5131 = vst [vmem:[#allocation11_spill] sm:$0xff] %v4391_v0  ;;  %v3444_v8 = vpop.eup %3443  ;;  %v1453_v10 = vmul.bf16 1056980736, %v3440_v4  ;;  %v1415_v55 = vmul.bf16 1056980736, %v3442_v30  ;;  %3455 = vtanh.bf16 %v1315_v21  ;;  %v1752_v3 = vadd.f32 %v4277_v54, %v1655_v17  ;;  %v4394_v41 = vpop.f32.mrf.mxu0 }
 0x222   : > { %v3446_v62 = vpop.eup %3445  ;;  %v1724_v35 = vrot.slane %v1723_v34, 4  ;;  %v1740_v11 = vadd.f32 %v1739_v13, %v1704_v43  ;;  %v1454_v19 = vmul.bf16 1056980736, %v3444_v8  ;;  %v4396_v12 = vpop.f32.mrf.mxu1  ;;  %3457 = vtanh.bf16 %v1297_v27 }
 0x223   : > { %5132 = vst [vmem:[#allocation12_spill] sm:$0xff] %v4396_v12  ;;  %v1513_v36 = vadd.bf16 1056980736, %v1453_v10  ;;  %v1475_v14 = vadd.bf16 1056980736, %v1415_v55  ;;  %v1665_v59 = vunpack.c.h.bf16 %v4358_v20  ;;  %v1769_v60 = vadd.f32 %v4343_v32, %v1656_v2  ;;  %v4411_v20 = vpop.f32.mrf.mxu0 }
 0x224   : > { %v1416_v29 = vmul.bf16 1056980736, %v3446_v62  ;;  %v1725_v38 = vadd.f32 %v1724_v35, %v1723_v34  ;;  %v1741_v4 = vrot.slane %v1740_v11, 4  ;;  %v1514_v30 = vadd.bf16 1056980736, %v1454_v19  ;;  %v4399_v21 = vpop.f32.mrf.mxu1 }
 0x225   : > { %5133 = vst [vmem:[#allocation13_spill] sm:$0xff] %v4399_v21  ;;  %v1573_v54 = vmul.bf16 %v1513_v36, %v4271_v42  ;;  %v1535_v17 = vmul.bf16 %v1475_v14, %v4279_v6  ;;  %v1013_v43 = vadd.f32 %v4267_v37, %v4116_v33  ;;  %v1082_v19 = vadd.f32 %v4251_v49, %v4384_v23 }
 0x226   : > { %v3448_v13 = vpop.eup %3447  ;;  %v1726_v8 = vrot.slane %v1725_v38, 2  ;;  %v1742_v10 = vadd.f32 %v1741_v4, %v1740_v11  ;;  %v4407_v35 = vmul.bf16 %v1514_v30, %v4286_v52  ;;  %v4413_v27 = vpop.f32.mrf.mxu1  ;;  %v1753_v42 = vadd.f32 %v1752_v3, %v1665_v59 }
 0x227   : > { %5134 = vst [vmem:[#allocation14_spill] sm:$0xff] %v4413_v27  ;;  %v3450_v32 = vpop.eup %3449  ;;  %v1666_v34 = vunpack.c.h.bf16 %v1564_v53  ;;  %v1675_v6 = vunpack.c.l.bf16 %v1573_v54  ;;  %v1476_v2 = vadd.bf16 1056980736, %v1416_v29  ;;  %v1597_v62 = vunpack.c.l.bf16 %v1535_v17  ;;  %v4422_v53 = vpop.f32.mrf.mxu0 }
 0x228   : > { %v1727_v55 = vadd.f32 %v1726_v8, %v1725_v38  ;;  %v1743_v37 = vrot.slane %v1742_v10, 2  ;;  %v1607_v36 = vunpack.c.h.bf16 %v1535_v17  ;;  %v4415_v11 = vpop.f32.mrf.mxu1  ;;  %v1676_v4 = vunpack.c.l.bf16 %v4407_v35 }
 0x229   : > { %5135 = vst [vmem:[#allocation15_spill] sm:$0xff] %v4415_v11  ;;  %v3452_v52 = vpop.eup %3451  ;;  %v1770_v14 = vadd.f32 %v1769_v60, %v1666_v34  ;;  %v1463_v49 = vmul.bf16 1056980736, %v3448_v13  ;;  %v4418_v30 = vpack.c.bf16 %v1013_v43, %v1009_v7  ;;  %v1425_v59 = vmul.bf16 1056980736, %v3450_v32 }
 0x22a   : > { %v3454_v63 = vpop.eup %3453  ;;  %v1728_v27 = vrot.slane %v1727_v55, 1  ;;  %v1744_v21 = vadd.f32 %v1743_v37, %v1742_v10  ;;  %v1086_v3 = vadd.f32 %v4281_v16, %v4384_v23  ;;  %v4424_v29 = vpop.f32.mrf.mxu1  ;;  %v1685_v38 = vunpack.c.h.bf16 %v1573_v54 }
 0x22b   : > { %v1754_v17 = vadd.f32 %v1753_v42, %v1675_v6  ;;  %v1686_v60 = vunpack.c.h.bf16 %v4407_v35  ;;  %v1523_v8 = vadd.bf16 1056980736, %v1463_v49  ;;  %v1781_v13 = vadd.f32 %v1607_v36, %v1597_v62  ;;  %v4433_v35 = vpop.f32.mrf.mxu0 }
 0x22c   : > { %v1745_v34 = vrot.slane %v1744_v21, 1  ;;  %v1536_v7 = vmul.bf16 %v1476_v2, %v4288_v56  ;;  %v1485_v43 = vadd.bf16 1056980736, %v1425_v59  ;;  %v1771_v11 = vadd.f32 %v1770_v14, %v1676_v4  ;;  %v4429_v16 = vpop.f32.mrf.mxu1 }
 0x22d   : > { %v1583_v10 = vmul.bf16 %v1523_v8, %v4318_v24  ;;  %v1464_v32 = vmul.bf16 1056980736, %v3452_v52  ;;  %v1426_v37 = vmul.bf16 1056980736, %v3454_v63  ;;  %v1729_v12 = vadd.f32 %v1728_v27, %v1727_v55 }
 0x22e   : > { %v1746_v0 = vadd.f32 %v1745_v34, %v1744_v21  ;;  %v1545_v54 = vmul.bf16 %v1485_v43, %v4327_v57  ;;  %v1316_v42 = vmul.bf16 1056980736, %v4418_v30  ;;  %v1755_v62 = vadd.f32 %v1754_v17, %v1685_v38  ;;  %v4438_v57 = vpop.f32.mrf.mxu1  ;;  %v4440_v17 = vpop.f32.mrf.mxu0 }
 0x22f   : > { %v3456_v6 = vpop.eup %3455  ;;  %v1695_v36 = vunpack.c.l.bf16 %v1583_v10  ;;  %v1524_v56 = vadd.bf16 1056980736, %v1464_v32  ;;  %v1486_v2 = vadd.bf16 1056980736, %v1426_v37  ;;  %v4435_v52 = vpack.c.bf16 %v1086_v3, %v1082_v19  ;;  %v4448_v3 = vld [vmem:[%s5105_s4 + $0x8] sm:$0x3] }
 0x230   : > { %v1893_v14 = vcombine.low %v1729_v12, %v1746_v0  ;;  %v1617_v4 = vunpack.c.l.bf16 %v1545_v54  ;;  %v1435_v24 = vmul.bf16 1056980736, %v3456_v6  ;;  %v3458_v63 = vpop.eup %3457  ;;  %v1705_v49 = vunpack.c.h.bf16 %v1583_v10 }
 0x231   : > { %v1756_v27 = vadd.f32 %v1755_v62, %v1695_v36  ;;  %v1584_v21 = vmul.bf16 %v1524_v56, %v4329_v28  ;;  %3459 = vtanh.bf16 %v1316_v42  ;;  %v1598_v55 = vunpack.c.l.bf16 %v1536_v7  ;;  %v4461_v62 = vpop.f32.mrf.mxu0 }
 0x232   : > { %v1608_v59 = vunpack.c.h.bf16 %v1536_v7  ;;  %v1495_v8 = vadd.bf16 1056980736, %v1435_v24  ;;  %v1417_v38 = vmul.bf16 1056980736, %v3458_v63  ;;  %v1772_v34 = vadd.f32 %v1771_v11, %v1686_v60  ;;  %v4454_v60 = vpop.f32.mrf.mxu1 }
 0x233   : > { %v1757_v0 = vadd.f32 %v1756_v27, %v1705_v49  ;;  %v1696_v12 = vunpack.c.l.bf16 %v1584_v21  ;;  %v4443_v19 = vmul.bf16 %v1486_v2, %v4331_v31  ;;  %v1782_v28 = vadd.f32 %v1781_v13, %v1617_v4 }
 0x234   : > { %v4451_v43 = vmul.bf16 %v1495_v8, %v4367_v46  ;;  %v1477_v7 = vadd.bf16 1056980736, %v1417_v38  ;;  %v1706_v32 = vunpack.c.h.bf16 %v1584_v21  ;;  %v1298_v11 = vmul.bf16 1056980736, %v4435_v52  ;;  %v4477_v21 = vpop.f32.mrf.mxu1  ;;  %v4487_v38 = vpop.f32.mrf.mxu0 }
 0x235   : > { %v1758_v10 = vrot.slane %v1757_v0, 4  ;;  %v1773_v37 = vadd.f32 %v1772_v34, %v1696_v12  ;;  %v4457_v31 = vrot.slane %v1893_v14, %v4379_v51  ;;  %v4459_v42 = vadd.f32 %v1608_v59, %v1598_v55 }
 0x236   : > { %v1627_v6 = vunpack.c.h.bf16 %v1545_v54  ;;  %v4465_v46 = vrot.slane %v4448_v3, %v4022_v61  ;;  %v1618_v56 = vunpack.c.l.bf16 %v4443_v19  ;;  %3461 = vtanh.bf16 %v1298_v11  ;;  %v1115_v11 = vpop.f32.mrf.mxu0 }
 0x237   : > { %v1759_v13 = vadd.f32 %v1758_v10, %v1757_v0  ;;  %v1774_v36 = vadd.f32 %v1773_v37, %v1706_v32  ;;  %v1628_v4 = vunpack.c.h.bf16 %v4443_v19  ;;  %v1637_v14 = vunpack.c.l.bf16 %v4451_v43 }
 0x238   : > { %v1783_v2 = vadd.f32 %v1782_v28, %v1627_v6  ;;  %v4471_v24 = vmul.bf16 %v1477_v7, %v4369_v22  ;;  %v1017_v49 = vadd.f32 %v4283_v48, %v4103_v15  ;;  %v1090_v27 = vadd.f32 %v4308_v1, %v4323_v25 }
 0x239   : > { %v1760_v54 = vrot.slane %v1759_v13, 2  ;;  %v1775_v63 = vrot.slane %v1774_v36, 4  ;;  %v1019_v55 = vadd.f32 %v4297_v18, %v4116_v33  ;;  %v1092_v59 = vadd.f32 %v4336_v39, %v4384_v23 }
 0x23a   : > { %v1021_v22 = vadd.f32 %v4310_v45, %v4103_v15  ;;  %v1094_v8 = vadd.f32 %v4353_v26, %v4323_v25  ;;  %v1023_v1 = vadd.f32 %v4325_v40, %v4116_v33  ;;  %v1096_v0 = vadd.f32 %v4374_v9, %v4384_v23  ;;  %v4505_v40 = vpop.f32.mrf.mxu1 }
 0x23b   : > { %v1761_v48 = vadd.f32 %v1760_v54, %v1759_v13  ;;  %v1776_v34 = vadd.f32 %v1775_v63, %v1774_v36  ;;  %v1027_v45 = vadd.f32 %v4338_v44, %v4103_v15  ;;  %v1100_v39 = vadd.f32 %v4394_v41, %v4323_v25 }
 0x23c   : > { %v4493_v18 = vpack.c.bf16 %v1021_v22, %v1017_v49  ;;  %v4495_v12 = vpack.c.bf16 %v1094_v8, %v1090_v27  ;;  %v4501_v7 = vpack.c.bf16 %v1023_v1, %v1019_v55  ;;  %v4503_v10 = vpack.c.bf16 %v1096_v0, %v1092_v59  ;;  %v4523_v59 = vpop.f32.mrf.mxu1 }
 0x23d   : > { %v1762_v26 = vrot.slane %v1761_v48, 1  ;;  %v1777_v28 = vrot.slane %v1776_v34, 2  ;;  %v1029_v37 = vadd.f32 %v4345_v5, %v4116_v33  ;;  %v1102_v44 = vadd.f32 %v4411_v20, %v4384_v23 }
 0x23e   : > { %v1325_v9 = vmul.bf16 1056980736, %v4493_v18  ;;  %v1307_v32 = vmul.bf16 1056980736, %v4495_v12  ;;  %v1326_v36 = vmul.bf16 1056980736, %v4501_v7  ;;  %v1031_v49 = vadd.f32 %v4355_v58, %v4103_v15  ;;  %v1119_v58 = vpop.f32.mrf.mxu0 }
 0x23f   : > { %v3460_v41 = vpop.eup %3459  ;;  %v1763_v6 = vadd.f32 %v1762_v26, %v1761_v48  ;;  %v1778_v13 = vadd.f32 %v1777_v28, %v1776_v34  ;;  %v1308_v54 = vmul.bf16 1056980736, %v4503_v10  ;;  %v1104_v27 = vadd.f32 %v4422_v53, %v4323_v25 }
 0x240   : > { %v1436_v63 = vmul.bf16 1056980736, %v3460_v41  ;;  %3463 = vtanh.bf16 %v1325_v9  ;;  %v1033_v20 = vadd.f32 %v4365_v50, %v4116_v33  ;;  %v1106_v55 = vadd.f32 %v4433_v35, %v4384_v23  ;;  %v4539_v41 = vpop.f32.mrf.mxu1 }
 0x241   : > { %v1779_v5 = vrot.slane %v1778_v13, 1  ;;  %3465 = vtanh.bf16 %v1307_v32  ;;  %v4525_v8 = vpack.c.bf16 %v1031_v49, %v1027_v45  ;;  %v4527_v48 = vpack.c.bf16 %v1104_v27, %v1100_v39 }
 0x242   : > { %v1496_v22 = vadd.bf16 1056980736, %v1436_v63  ;;  %3467 = vtanh.bf16 %v1326_v36  ;;  %v4529_v53 = vpack.c.bf16 %v1033_v20, %v1029_v37  ;;  %v4531_v1 = vpack.c.bf16 %v1106_v55, %v1102_v44 }
 0x243   : > { %v1780_v34 = vadd.f32 %v1779_v5, %v1778_v13  ;;  %3469 = vtanh.bf16 %v1308_v54  ;;  %v1799_v50 = vadd.f32 %v4459_v42, %v1618_v56  ;;  %v1784_v0 = vadd.f32 %v1783_v2, %v1637_v14  ;;  %v1121_v56 = vpop.f32.mrf.mxu0  ;;  %v4562_v5 = vpop.f32.mrf.mxu1 }
 0x244   : > { %v1335_v35 = vmul.bf16 1056980736, %v4525_v8  ;;  %v1317_v26 = vmul.bf16 1056980736, %v4527_v48  ;;  %v3462_v28 = vpop.eup %3461  ;;  %v1599_v45 = vunpack.c.l.bf16 %v4471_v24  ;;  %v1336_v39 = vmul.bf16 1056980736, %v4529_v53 }
 0x245   : > { %v1894_v9 = vcombine.low %v1763_v6, %v1780_v34  ;;  %v1318_v32 = vmul.bf16 1056980736, %v4531_v1  ;;  %v1609_v37 = vunpack.c.h.bf16 %v4471_v24  ;;  %v4543_v44 = vmul.bf16 %v1496_v22, %v4418_v30  ;;  %v5136_v24 = vld [vmem:[#allocation11_spill] sm:$0xff]  ;;  %v5137_v30 = vld [vmem:[#allocation12_spill] sm:$0xff]  ;;  %v1123_v22 = vpop.f32.mrf.mxu0 }
 0x246   : > { %v1418_v42 = vmul.bf16 1056980736, %v3462_v28  ;;  %3471 = vtanh.bf16 %v1335_v35  ;;  %v1037_v14 = vadd.f32 %v4376_v47, %v4103_v15  ;;  %v1110_v6 = vadd.f32 %v4440_v17, %v4323_v25  ;;  %v5138_v47 = vld [vmem:[#allocation13_spill] sm:$0xff] }
 0x247   : > { %v4546_v2 = vrot.slane %v1894_v9, %v4379_v51  ;;  %3473 = vtanh.bf16 %v1317_v26  ;;  %v1039_v36 = vadd.f32 %v5136_v24, %v4116_v33  ;;  %v1041_v54 = vadd.f32 %v5137_v30, %v4103_v15  ;;  %v5139_v26 = vld [vmem:[#allocation10_spill] sm:$0xff] }
 0x248   : > { %v1478_v13 = vadd.bf16 1056980736, %v1418_v42  ;;  %3475 = vtanh.bf16 %v1336_v39  ;;  %v1114_v49 = vadd.f32 %v4487_v38, %v4323_v25  ;;  %v1043_v27 = vadd.f32 %v5138_v47, %v4116_v33 }
 0x249   : > { %3477 = vtanh.bf16 %v1318_v32  ;;  %v1638_v17 = vunpack.c.l.bf16 %v4543_v44  ;;  %v1112_v20 = vadd.f32 %v4461_v62, %v4384_v23  ;;  %v4567_v55 = vpack.c.bf16 %v1041_v54, %v1037_v14  ;;  %v4591_v14 = vpop.f32.mrf.mxu1 }
 0x24a   : > { %v1116_v15 = vadd.f32 %v1115_v11, %v4384_v23  ;;  %v1647_v34 = vunpack.c.h.bf16 %v4451_v43  ;;  %v4571_v35 = vpack.c.bf16 %v1114_v49, %v1110_v6  ;;  %v4573_v38 = vpack.c.bf16 %v1043_v27, %v1039_v36 }
 0x24b   : > { %v4577_v33 = vrot.slane %v4448_v3, %v5139_v26  ;;  %v1800_v28 = vadd.f32 %v1799_v50, %v1628_v4  ;;  %v1538_v62 = vmul.bf16 %v1478_v13, %v4435_v52  ;;  %v1345_v9 = vmul.bf16 1056980736, %v4567_v55  ;;  %v1125_v50 = vpop.f32.mrf.mxu0  ;;  %v4600_v27 = vpop.f32.mrf.mxu1 }
 0x24c   : > { %v4583_v39 = vpack.c.bf16 %v1116_v15, %v1112_v20  ;;  %v4585_v11 = vadd.f32 %v1784_v0, %v1647_v34  ;;  %v4587_v43 = vadd.f32 %v1609_v37, %v1599_v45  ;;  %v1327_v32 = vmul.bf16 1056980736, %v4571_v35  ;;  %v5140_v15 = vld [vmem:[#allocation14_spill] sm:$0xff] }
 0x24d   : > { %v1346_v42 = vmul.bf16 1056980736, %v4573_v38  ;;  %v1648_v19 = vunpack.c.h.bf16 %v4543_v44  ;;  %v1801_v4 = vadd.f32 %v1800_v28, %v1638_v17  ;;  %3479 = vtanh.bf16 %v1345_v9 }
 0x24e   : > { %v3464_v3 = vpop.eup %3463  ;;  %v1328_v52 = vmul.bf16 1056980736, %v4583_v39  ;;  %3481 = vtanh.bf16 %v1327_v32  ;;  %v1120_v0 = vadd.f32 %v1119_v58, %v4323_v25  ;;  %v1124_v45 = vadd.f32 %v1123_v22, %v4323_v25 }
 0x24f   : > { %v3466_v6 = vpop.eup %3465  ;;  %v1445_v13 = vmul.bf16 1056980736, %v3464_v3  ;;  %v1600_v24 = vunpack.c.l.bf16 %v1538_v62  ;;  %3483 = vtanh.bf16 %v1346_v42  ;;  %v1177_v30 = vadd.f32 %v4424_v29, %v4465_v46 }
 0x250   : > { %v3468_v37 = vpop.eup %3467  ;;  %v1427_v36 = vmul.bf16 1056980736, %v3466_v6  ;;  %3485 = vtanh.bf16 %v1328_v52  ;;  %v1126_v47 = vadd.f32 %v1125_v50, %v4384_v23  ;;  %v1610_v17 = vunpack.c.h.bf16 %v1538_v62 }
 0x251   : > { %v3470_v44 = vpop.eup %3469  ;;  %v1505_v54 = vadd.bf16 1056980736, %v1445_v13  ;;  %v1446_v49 = vmul.bf16 1056980736, %v3468_v37  ;;  %v1173_v22 = vadd.f32 %v5140_v15, %v4465_v46  ;;  %v1122_v28 = vadd.f32 %v1121_v56, %v4384_v23  ;;  %v4616_v37 = vpop.f32.mrf.mxu1 }
 0x252   : > { %v1487_v20 = vadd.bf16 1056980736, %v1427_v36  ;;  %v1428_v58 = vmul.bf16 1056980736, %v3470_v44  ;;  %v4606_v29 = vpack.c.bf16 %v1124_v45, %v1120_v0  ;;  %v1179_v62 = vadd.f32 %v4429_v16, %v4577_v33 }
 0x253   : > { %v1565_v34 = vmul.bf16 %v1505_v54, %v4493_v18  ;;  %v1506_v26 = vadd.bf16 1056980736, %v1446_v49  ;;  %v4609_v3 = vpack.c.bf16 %v1177_v30, %v1173_v22  ;;  %v1802_v50 = vadd.f32 %v1801_v4, %v1648_v19  ;;  %v4627_v22 = vpop.f32.mrf.mxu1 }
 0x254   : > { %v3472_v9 = vpop.eup %3471  ;;  %v1547_v32 = vmul.bf16 %v1487_v20, %v4495_v12  ;;  %v1488_v42 = vadd.bf16 1056980736, %v1428_v58  ;;  %v4614_v18 = vpack.c.bf16 %v1126_v47, %v1122_v28  ;;  %v1832_v0 = vadd.f32 %v1610_v17, %v1600_v24  ;;  %v5141_v12 = vld [vmem:[#allocation15_spill] sm:$0xff] }
 0x255   : > { %v3474_v52 = vpop.eup %3473  ;;  %v1566_v6 = vmul.bf16 %v1506_v26, %v4501_v7  ;;  %v1455_v13 = vmul.bf16 1056980736, %v3472_v9  ;;  %v1657_v45 = vunpack.c.l.bf16 %v1565_v34  ;;  %v1175_v30 = vadd.f32 %v5141_v12, %v4577_v33 }
 0x256   : > { %v3476_v56 = vpop.eup %3475  ;;  %v1437_v36 = vmul.bf16 1056980736, %v3474_v52  ;;  %v1619_v54 = vunpack.c.l.bf16 %v1547_v32  ;;  %v1548_v16 = vmul.bf16 %v1488_v42, %v4503_v10  ;;  %v1337_v19 = vmul.bf16 1056980736, %v4606_v29  ;;  %v1129_v42 = vpop.f32.mrf.mxu0 }
 0x257   : > { %v3478_v44 = vpop.eup %3477  ;;  %v1515_v49 = vadd.bf16 1056980736, %v1455_v13  ;;  %v1658_v7 = vunpack.c.l.bf16 %v1566_v6  ;;  %v1299_v47 = vmul.bf16 1056980736, %v4609_v3  ;;  %v4623_v20 = vpack.c.bf16 %v1179_v62, %v1175_v30 }
 0x258   : > { %v1497_v4 = vadd.bf16 1056980736, %v1437_v36  ;;  %v1667_v58 = vunpack.c.h.bf16 %v1565_v34  ;;  %v1456_v17 = vmul.bf16 1056980736, %v3476_v56  ;;  %v1338_v15 = vmul.bf16 1056980736, %v4614_v18 }
 0x259   : > { %v1575_v24 = vmul.bf16 %v1515_v49, %v4525_v8  ;;  %v1786_v26 = vadd.f32 %v4585_v11, %v1657_v45  ;;  %v1629_v10 = vunpack.c.h.bf16 %v1547_v32  ;;  %v1438_v9 = vmul.bf16 1056980736, %v3478_v44  ;;  %v4633_v32 = vpop.f32.mrf.mxu1  ;;  %v1131_v44 = vpop.f32.mrf.mxu0 }
 0x25a   : > { %v1557_v28 = vmul.bf16 %v1497_v4, %v4527_v48  ;;  %v1816_v52 = vadd.f32 %v4587_v43, %v1619_v54  ;;  %v1668_v13 = vunpack.c.h.bf16 %v1566_v6  ;;  %v1620_v62 = vunpack.c.l.bf16 %v1548_v16 }
 0x25b   : > { %v1516_v36 = vadd.bf16 1056980736, %v1456_v17  ;;  %v3480_v34 = vpop.eup %3479  ;;  %v1803_v12 = vadd.f32 %v1802_v50, %v1658_v7  ;;  %v1630_v8 = vunpack.c.h.bf16 %v1548_v16  ;;  %v1677_v56 = vunpack.c.l.bf16 %v1575_v24 }
 0x25c   : > { %v1498_v30 = vadd.bf16 1056980736, %v1438_v9  ;;  %v3482_v49 = vpop.eup %3481  ;;  %v1639_v63 = vunpack.c.l.bf16 %v1557_v28  ;;  %v1465_v11 = vmul.bf16 1056980736, %v3480_v34  ;;  %3487 = vtanh.bf16 %v1337_v19 }
 0x25d   : > { %v1576_v61 = vmul.bf16 %v1516_v36, %v4529_v53  ;;  %v3484_v48 = vpop.eup %3483  ;;  %v1787_v45 = vadd.f32 %v1786_v26, %v1667_v58  ;;  %v1447_v6 = vmul.bf16 1056980736, %v3482_v49  ;;  %3489 = vtanh.bf16 %v1299_v47 }
 0x25e   : > { %v4636_v43 = vmul.bf16 %v1498_v30, %v4531_v1  ;;  %v3486_v50 = vpop.eup %3485  ;;  %v1817_v54 = vadd.f32 %v1816_v52, %v1629_v10  ;;  %v1833_v16 = vadd.f32 %v1832_v0, %v1620_v62  ;;  %v1525_v4 = vadd.bf16 1056980736, %v1465_v11  ;;  %v4640_v1 = vpop.f32.mrf.mxu1 }
 0x25f   : > { %v1678_v7 = vunpack.c.l.bf16 %v1576_v61  ;;  %v1804_v17 = vadd.f32 %v1803_v12, %v1668_v13  ;;  %v1687_v9 = vunpack.c.h.bf16 %v1575_v24  ;;  %v1788_v53 = vadd.f32 %v1787_v45, %v1677_v56  ;;  %v1133_v0 = vpop.f32.mrf.mxu0 }
 0x260   : > { %v1507_v36 = vadd.bf16 1056980736, %v1447_v6  ;;  %v1818_v19 = vadd.f32 %v1817_v54, %v1639_v63  ;;  %v1640_v34 = vunpack.c.l.bf16 %v4636_v43  ;;  %v1585_v58 = vmul.bf16 %v1525_v4, %v4567_v55  ;;  %v4647_v11 = vpop.f32.mrf.mxu1 }
 0x261   : > { %v1466_v26 = vmul.bf16 1056980736, %v3484_v48  ;;  %v1805_v30 = vadd.f32 %v1804_v17, %v1678_v7  ;;  %v1448_v47 = vmul.bf16 1056980736, %v3486_v50  ;;  %3491 = vtanh.bf16 %v1338_v15 }
 0x262   : > { %v1300_v10 = vmul.bf16 1056980736, %v4623_v20  ;;  %v1649_v52 = vunpack.c.h.bf16 %v1557_v28  ;;  %v1697_v62 = vunpack.c.l.bf16 %v1585_v58  ;;  %v4644_v24 = vmul.bf16 %v1507_v36, %v4571_v35  ;;  %v1135_v28 = vpop.f32.mrf.mxu0 }
 0x263   : > { %v1526_v13 = vadd.bf16 1056980736, %v1466_v26  ;;  %v1834_v63 = vadd.f32 %v1833_v16, %v1630_v8  ;;  %v1688_v12 = vunpack.c.h.bf16 %v1576_v61  ;;  %v1789_v56 = vadd.f32 %v1788_v53, %v1687_v9  ;;  %v4659_v53 = vpop.f32.mrf.mxu1 }
 0x264   : > { %v1819_v49 = vadd.f32 %v1818_v19, %v1649_v52  ;;  %3493 = vtanh.bf16 %v1300_v10  ;;  %v1650_v15 = vunpack.c.h.bf16 %v4636_v43  ;;  %v1508_v6 = vadd.bf16 1056980736, %v1448_v47 }
 0x265   : > { %v1586_v55 = vmul.bf16 %v1526_v13, %v4573_v38  ;;  %v1806_v48 = vadd.f32 %v1805_v30, %v1688_v12  ;;  %v1835_v45 = vadd.f32 %v1834_v63, %v1640_v34  ;;  %v1707_v50 = vunpack.c.h.bf16 %v1585_v58 }
 0x266   : > { %v1790_v54 = vadd.f32 %v1789_v56, %v1697_v62  ;;  %v1659_v35 = vunpack.c.l.bf16 %v4644_v24  ;;  %v1130_v61 = vadd.f32 %v1129_v42, %v4323_v25  ;;  %v1183_v8 = vadd.f32 %v4438_v57, %v4465_v46 }
 0x267   : > { %v1698_v7 = vunpack.c.l.bf16 %v1586_v55  ;;  %v1132_v38 = vadd.f32 %v1131_v44, %v4384_v23  ;;  %v1134_v16 = vadd.f32 %v1133_v0, %v4323_v25  ;;  %v1708_v4 = vunpack.c.h.bf16 %v1586_v55 }
 0x268   : > { %v1187_v43 = vadd.f32 %v4477_v21, %v4465_v46  ;;  %v1136_v9 = vadd.f32 %v1135_v28, %v4384_v23  ;;  %v4662_v36 = vmul.bf16 %v1508_v6, %v4583_v39  ;;  %v1185_v42 = vadd.f32 %v4454_v60, %v4577_v33 }
 0x269   : > { %v1807_v17 = vadd.f32 %v1806_v48, %v1698_v7  ;;  %v4666_v57 = vpack.c.bf16 %v1134_v16, %v1130_v61  ;;  %v1189_v25 = vadd.f32 %v4505_v40, %v4577_v33  ;;  %v1791_v19 = vadd.f32 %v1790_v54, %v1707_v50  ;;  %v4678_v40 = vpop.f32.mrf.mxu1 }
 0x26a   : > { %v3488_v44 = vpop.eup %3487  ;;  %v4670_v58 = vpack.c.bf16 %v1187_v43, %v1183_v8  ;;  %v4672_v21 = vpack.c.bf16 %v1136_v9, %v1132_v38  ;;  %v1836_v26 = vadd.f32 %v1835_v45, %v1650_v15  ;;  %v1820_v60 = vadd.f32 %v1819_v49, %v1659_v35 }
 0x26b   : > { %v1808_v34 = vadd.f32 %v1807_v17, %v1708_v4  ;;  %v3490_v23 = vpop.eup %3489  ;;  %v1457_v30 = vmul.bf16 1056980736, %v3488_v44  ;;  %v1347_v39 = vmul.bf16 1056980736, %v4666_v57  ;;  %v4675_v47 = vpack.c.bf16 %v1189_v25, %v1185_v42  ;;  %v1222_v35 = vpop.f32.mrf.mxu1 }
 0x26c   : > { %v1419_v0 = vmul.bf16 1056980736, %v3490_v23  ;;  %v1309_v52 = vmul.bf16 1056980736, %v4670_v58  ;;  %v1348_v13 = vmul.bf16 1056980736, %v4672_v21  ;;  %v1660_v56 = vunpack.c.l.bf16 %v4662_v36 }
 0x26d   : > { %v1809_v10 = vrot.slane %v1808_v34, 4  ;;  %v1517_v62 = vadd.bf16 1056980736, %v1457_v30  ;;  %3495 = vtanh.bf16 %v1347_v39  ;;  %v1310_v63 = vmul.bf16 1056980736, %v4675_v47  ;;  %v1224_v42 = vpop.f32.mrf.mxu1 }
 0x26e   : > { %v1792_v12 = vrot.slane %v1791_v19, 4  ;;  %v1479_v55 = vadd.bf16 1056980736, %v1419_v0  ;;  %3497 = vtanh.bf16 %v1309_v52  ;;  %v1193_v15 = vadd.f32 %v4523_v59, %v4465_v46 }
 0x26f   : > { %v3492_v48 = vpop.eup %3491  ;;  %v1577_v49 = vmul.bf16 %v1517_v62, %v4606_v29  ;;  %3499 = vtanh.bf16 %v1348_v13  ;;  %v1197_v45 = vadd.f32 %v4562_v5, %v4465_v46  ;;  %v1669_v6 = vunpack.c.h.bf16 %v4644_v24  ;;  %v1226_v52 = vpop.f32.mrf.mxu1 }
 0x270   : > { %v1810_v28 = vadd.f32 %v1809_v10, %v1808_v34  ;;  %v1539_v50 = vmul.bf16 %v1479_v55, %v4609_v3  ;;  %v1458_v54 = vmul.bf16 1056980736, %v3492_v48  ;;  %3501 = vtanh.bf16 %v1310_v63 }
 0x271   : > { %v1679_v7 = vunpack.c.l.bf16 %v1577_v49  ;;  %v4690_v61 = vpack.c.bf16 %v1197_v45, %v1193_v15  ;;  %v1821_v29 = vadd.f32 %v1820_v60, %v1669_v6  ;;  %v1670_v38 = vunpack.c.h.bf16 %v4662_v36 }
 0x272   : > { %v3494_v8 = vpop.eup %3493  ;;  %v1837_v16 = vadd.f32 %v1836_v26, %v1660_v56  ;;  %v4693_v59 = vadd.f32 %v1792_v12, %v1791_v19  ;;  %v1518_v4 = vadd.bf16 1056980736, %v1458_v54  ;;  %v1811_v17 = vrot.slane %v1810_v28, 2 }
 0x273   : > { %v1420_v5 = vmul.bf16 1056980736, %v3494_v8  ;;  %v1319_v24 = vmul.bf16 1056980736, %v4690_v61  ;;  %v1601_v43 = vunpack.c.l.bf16 %v1539_v50  ;;  %v1195_v3 = vadd.f32 %v4539_v41, %v4577_v33 }
 0x274   : > { %v1199_v9 = vadd.f32 %v4591_v14, %v4577_v33  ;;  %v1822_v25 = vadd.f32 %v1821_v29, %v1679_v7  ;;  %v1611_v44 = vunpack.c.h.bf16 %v1539_v50  ;;  %v1578_v36 = vmul.bf16 %v1518_v4, %v4614_v18 }
 0x275   : > { %3503 = vtanh.bf16 %v1319_v24  ;;  %v1480_v19 = vadd.bf16 1056980736, %v1420_v5  ;;  %v1203_v23 = vadd.f32 %v4600_v27, %v4465_v46  ;;  %v1207_v26 = vadd.f32 %v4627_v22, %v4465_v46 }
 0x276   : > { %v4701_v34 = vpack.c.bf16 %v1199_v9, %v1195_v3  ;;  %v1689_v30 = vunpack.c.h.bf16 %v1577_v49  ;;  %v1680_v41 = vunpack.c.l.bf16 %v1578_v36  ;;  %v1205_v14 = vadd.f32 %v4616_v37, %v4577_v33 }
 0x277   : > { %v1209_v39 = vadd.f32 %v4633_v32, %v4577_v33  ;;  %v1794_v18 = vrot.slane %v4693_v59, 2  ;;  %v1838_v60 = vadd.f32 %v1837_v16, %v1670_v38  ;;  %v4713_v0 = vpack.c.bf16 %v1207_v26, %v1203_v23 }
 0x278   : > { %v1320_v10 = vmul.bf16 1056980736, %v4701_v34  ;;  %v4715_v27 = vadd.f32 %v1811_v17, %v1810_v28  ;;  %v1823_v62 = vadd.f32 %v1822_v25, %v1689_v30  ;;  %v1849_v22 = vadd.f32 %v1611_v44, %v1601_v43  ;;  %v1228_v28 = vpop.f32.mrf.mxu1 }
 0x279   : > { %v4717_v13 = vpack.c.bf16 %v1209_v39, %v1205_v14  ;;  %v1690_v63 = vunpack.c.h.bf16 %v1578_v36  ;;  %v4720_v37 = vmul.bf16 %v1480_v19, %v4623_v20  ;;  %v1329_v32 = vmul.bf16 1056980736, %v4713_v0 }
 0x27a   : > { %3505 = vtanh.bf16 %v1320_v10  ;;  %v1839_v56 = vadd.f32 %v1838_v60, %v1680_v41  ;;  %v1213_v48 = vadd.f32 %v4640_v1, %v4465_v46  ;;  %v1217_v49 = vadd.f32 %v4659_v53, %v4465_v46 }
 0x27b   : > { %v3496_v12 = vpop.eup %3495  ;;  %v1330_v55 = vmul.bf16 1056980736, %v4717_v13  ;;  %3507 = vtanh.bf16 %v1329_v32  ;;  %v1215_v20 = vadd.f32 %v4647_v11, %v4577_v33  ;;  %v1219_v6 = vadd.f32 %v4678_v40, %v4577_v33 }
 0x27c   : > { %v3498_v15 = vpop.eup %3497  ;;  %v1467_v45 = vmul.bf16 1056980736, %v3496_v12  ;;  %v4732_v7 = vpack.c.bf16 %v1217_v49, %v1213_v48  ;;  %v1223_v1 = vadd.f32 %v1222_v35, %v4465_v46  ;;  %v1227_v38 = vadd.f32 %v1226_v52, %v4465_v46 }
 0x27d   : > { %v3500_v50 = vpop.eup %3499  ;;  %v1429_v54 = vmul.bf16 1056980736, %v3498_v15  ;;  %3509 = vtanh.bf16 %v1330_v55  ;;  %v4735_v53 = vpack.c.bf16 %v1219_v6, %v1215_v20  ;;  %v1225_v40 = vadd.f32 %v1224_v42, %v4577_v33 }
 0x27e   : > { %v1527_v8 = vadd.bf16 1056980736, %v1467_v45  ;;  %v1468_v29 = vmul.bf16 1056980736, %v3500_v50  ;;  %v3502_v16 = vpop.eup %3501  ;;  %v1339_v11 = vmul.bf16 1056980736, %v4732_v7  ;;  %v1229_v5 = vadd.f32 %v1228_v28, %v4577_v33 }
 0x27f   : > { %v1489_v4 = vadd.bf16 1056980736, %v1429_v54  ;;  %v1430_v43 = vmul.bf16 1056980736, %v3502_v16  ;;  %v1340_v35 = vmul.bf16 1056980736, %v4735_v53  ;;  %v4744_v9 = vpack.c.bf16 %v1227_v38, %v1223_v1 }
 0x280   : > { %v1587_v24 = vmul.bf16 %v1527_v8, %v4666_v57  ;;  %v1528_v17 = vadd.bf16 1056980736, %v1468_v29  ;;  %3511 = vtanh.bf16 %v1339_v11  ;;  %v4746_v46 = vpack.c.bf16 %v1229_v5, %v1225_v40 }
 0x281   : > { %v1549_v3 = vmul.bf16 %v1489_v4, %v4670_v58  ;;  %v1602_v25 = vunpack.c.l.bf16 %v4720_v37  ;;  %v1490_v36 = vadd.bf16 1056980736, %v1430_v43  ;;  %v1840_v19 = vadd.f32 %v1839_v56, %v1690_v63 }
 0x282   : > { %v1699_v44 = vunpack.c.l.bf16 %v1587_v24  ;;  %v1588_v42 = vmul.bf16 %v1528_v17, %v4672_v21  ;;  %3513 = vtanh.bf16 %v1340_v35  ;;  %v1349_v23 = vmul.bf16 1056980736, %v4744_v9 }
 0x283   : > { %v3504_v33 = vpop.eup %3503  ;;  %v1621_v57 = vunpack.c.l.bf16 %v1549_v3  ;;  %v1709_v26 = vunpack.c.h.bf16 %v1587_v24  ;;  %v1550_v41 = vmul.bf16 %v1490_v36, %v4675_v47  ;;  %v1612_v14 = vunpack.c.h.bf16 %v4720_v37 }
 0x284   : > { %v1824_v30 = vadd.f32 %v1823_v62, %v1699_v44  ;;  %v1700_v58 = vunpack.c.l.bf16 %v1588_v42  ;;  %v1439_v39 = vmul.bf16 1056980736, %v3504_v33  ;;  %3515 = vtanh.bf16 %v1349_v23 }
 0x285   : > { %v1350_v60 = vmul.bf16 1056980736, %v4746_v46  ;;  %v1850_v21 = vadd.f32 %v1849_v22, %v1621_v57  ;;  %v1710_v52 = vunpack.c.h.bf16 %v1588_v42  ;;  %v1622_v63 = vunpack.c.l.bf16 %v1550_v41 }
 0x286   : > { %v1825_v10 = vadd.f32 %v1824_v30, %v1709_v26  ;;  %v1841_v32 = vadd.f32 %v1840_v19, %v1700_v58  ;;  %v1499_v12 = vadd.bf16 1056980736, %v1439_v39  ;;  %v1795_v62 = vadd.f32 %v1794_v18, %v4693_v59 }
 0x287   : > { %3517 = vtanh.bf16 %v1350_v60  ;;  %v1631_v47 = vunpack.c.h.bf16 %v1549_v3  ;;  %v1866_v37 = vadd.f32 %v1612_v14, %v1602_v25  ;;  %v1813_v22 = vrot.slane %v4715_v27, 1 }
 0x288   : > { %v3506_v56 = vpop.eup %3505  ;;  %v1826_v55 = vrot.slane %v1825_v10, 4  ;;  %v1842_v48 = vadd.f32 %v1841_v32, %v1710_v52  ;;  %v1559_v49 = vmul.bf16 %v1499_v12, %v4690_v61  ;;  %v1796_v38 = vrot.slane %v1795_v62, 1 }
 0x289   : > { %v1440_v15 = vmul.bf16 1056980736, %v3506_v56  ;;  %v3508_v45 = vpop.eup %3507  ;;  %v1851_v6 = vadd.f32 %v1850_v21, %v1631_v47  ;;  %v1867_v54 = vadd.f32 %v1866_v37, %v1622_v63  ;;  %v1632_v4 = vunpack.c.h.bf16 %v1550_v41 }
 0x28a   : > { %v1827_v20 = vadd.f32 %v1826_v55, %v1825_v10  ;;  %v1843_v28 = vrot.slane %v1842_v48, 4  ;;  %v1641_v1 = vunpack.c.l.bf16 %v1559_v49  ;;  %v1449_v29 = vmul.bf16 1056980736, %v3508_v45 }
 0x28b   : > { %v3510_v50 = vpop.eup %3509  ;;  %v1500_v8 = vadd.bf16 1056980736, %v1440_v15  ;;  %v1814_v5 = vadd.f32 %v1813_v22, %v4715_v27  ;;  %v1868_v3 = vadd.f32 %v1867_v54, %v1632_v4  ;;  %v1651_v25 = vunpack.c.h.bf16 %v1559_v49 }
 0x28c   : > { %v1828_v59 = vrot.slane %v1827_v20, 2  ;;  %v1844_v18 = vadd.f32 %v1843_v28, %v1842_v48  ;;  %v1450_v16 = vmul.bf16 1056980736, %v3510_v50  ;;  %v1852_v11 = vadd.f32 %v1851_v6, %v1641_v1 }
 0x28d   : > { %v1560_v61 = vmul.bf16 %v1500_v8, %v4701_v34  ;;  %v1509_v40 = vadd.bf16 1056980736, %v1449_v29  ;;  %v1797_v27 = vadd.f32 %v1796_v38, %v1795_v62 }
 0x28e   : > { %v1829_v24 = vadd.f32 %v1828_v59, %v1827_v20  ;;  %v1845_v17 = vrot.slane %v1844_v18, 2  ;;  %v1510_v43 = vadd.bf16 1056980736, %v1450_v16  ;;  %v3512_v35 = vpop.eup %3511  ;;  %v1853_v26 = vadd.f32 %v1852_v11, %v1651_v25 }
 0x28f   : > { %v1642_v44 = vunpack.c.l.bf16 %v1560_v61  ;;  %v1569_v42 = vmul.bf16 %v1509_v40, %v4713_v0  ;;  %v1459_v57 = vmul.bf16 1056980736, %v3512_v35  ;;  %v1652_v34 = vunpack.c.h.bf16 %v1560_v61 }
 0x290   : > { %v1830_v36 = vrot.slane %v1829_v24, 1  ;;  %v1846_v33 = vadd.f32 %v1845_v17, %v1844_v18  ;;  %v1570_v19 = vmul.bf16 %v1510_v43, %v4717_v13  ;;  %v3514_v23 = vpop.eup %3513  ;;  %v1895_v32 = vcombine.low %v1797_v27, %v1814_v5  ;;  %v1591_v5 = vld [vmem:[#allocation2] sm:$0xff] }
 0x291   : > { %v1869_v30 = vadd.f32 %v1868_v3, %v1642_v44  ;;  %v1661_v58 = vunpack.c.l.bf16 %v1569_v42  ;;  %v1519_v21 = vadd.bf16 1056980736, %v1459_v57  ;;  %v1460_v52 = vmul.bf16 1056980736, %v3514_v23 }
 0x292   : > { %v1847_v41 = vrot.slane %v1846_v33, 1  ;;  %v1662_v14 = vunpack.c.l.bf16 %v1570_v19  ;;  %v3516_v39 = vpop.eup %3515  ;;  %v1831_v0 = vadd.f32 %v1830_v36, %v1829_v24  ;;  %v1671_v13 = vunpack.c.h.bf16 %v1569_v42 }
 0x293   : > { %v1870_v60 = vadd.f32 %v1869_v30, %v1652_v34  ;;  %v1854_v10 = vadd.f32 %v1853_v26, %v1661_v58  ;;  %v1469_v12 = vmul.bf16 1056980736, %v3516_v39  ;;  %v1579_v47 = vmul.bf16 %v1519_v21, %v4732_v7  ;;  %v1592_v39 = vld [vmem:[#allocation2 + $0x8] sm:$0x3] }
 0x294   : > { %v1848_v63 = vadd.f32 %v1847_v41, %v1846_v33  ;;  %v1520_v48 = vadd.bf16 1056980736, %v1460_v52  ;;  %v1672_v45 = vunpack.c.h.bf16 %v1570_v19  ;;  %v1917_v6 = vrot.slane %v1895_v32, %v4379_v51 }
 0x295   : > { %v3518_v56 = vpop.eup %3517  ;;  %v1871_v55 = vadd.f32 %v1870_v60, %v1662_v14  ;;  %v1529_v49 = vadd.bf16 1056980736, %v1469_v12  ;;  %v1855_v15 = vadd.f32 %v1854_v10, %v1671_v13  ;;  %v1681_v22 = vunpack.c.l.bf16 %v1579_v47 }
 0x296   : > { %v1896_v37 = vcombine.low %v1831_v0, %v1848_v63  ;;  %v1470_v62 = vmul.bf16 1056980736, %v3518_v56  ;;  %v1580_v20 = vmul.bf16 %v1520_v48, %v4735_v53  ;;  %v1691_v8 = vunpack.c.h.bf16 %v1579_v47 }
 0x297   : > { %v1589_v50 = vmul.bf16 %v1529_v49, %v4744_v9  ;;  %v1872_v1 = vadd.f32 %v1871_v55, %v1672_v45  ;;  %v1856_v29 = vadd.f32 %v1855_v15, %v1681_v22  ;;  %v5142_v53 = vcombine.low %v4457_v31, %v4546_v2 }
 0x298   : > { %v1924_v28 = vrot.slane %v1896_v37, %v4379_v51  ;;  %v1530_v54 = vadd.bf16 1056980736, %v1470_v62  ;;  %v1682_v7 = vunpack.c.l.bf16 %v1580_v20  ;;  %v1692_v4 = vunpack.c.h.bf16 %v1580_v20 }
 0x299   : > { %v1701_v59 = vunpack.c.l.bf16 %v1589_v50  ;;  %v1857_v16 = vadd.f32 %v1856_v29, %v1691_v8  ;;  %v1933_v61 = vrot.slane %v5142_v53, %v4379_v51  ;;  %v1711_v17 = vunpack.c.h.bf16 %v1589_v50 }
 0x29a   : > { %v1926_v38 = vcombine.low %v1917_v6, %v1924_v28  ;;  %v1590_v18 = vmul.bf16 %v1530_v54, %v4746_v46  ;;  %v1873_v11 = vadd.f32 %v1872_v1, %v1682_v7  ;;  %v5143_v10 = vlaneseq }
 0x29b   : > { %v1858_v43 = vadd.f32 %v1857_v16, %v1701_v59 }
 0x29c   : > { %v1940_v40 = vrot.slane %v1926_v38, %v4379_v51  ;;  %v1702_v9 = vunpack.c.l.bf16 %v1590_v18  ;;  %v1874_v24 = vadd.f32 %v1873_v11, %v1692_v4  ;;  %v1712_v25 = vunpack.c.h.bf16 %v1590_v18 }
 0x29d   : > { %v1859_v3 = vadd.f32 %v1858_v43, %v1711_v17  ;;  %vm1964_vm2 = vcmp.lt.s32.totalorder %v5143_v10, 256 }
 0x29e   : > { %v1941_v35 = vcombine.low %v1933_v61, %v1940_v40  ;;  %v1875_v44 = vadd.f32 %v1874_v24, %v1702_v9 }
 0x29f   : > { %v1860_v42 = vrot.slane %v1859_v3, 4 }
 0x2a0   : > { %v1959_v46 = vadd.f32 %v1941_v35, %v1591_v5  ;;  %v1876_v36 = vadd.f32 %v1875_v44, %v1712_v25 }
 0x2a1   : > { %v1861_v33 = vadd.f32 %v1860_v42, %v1859_v3 }
 0x2a2   : > { %1961 = vst [vmem:[#allocation2] sm:$0xff] %v1959_v46  ;;  %v1877_v19 = vrot.slane %v1876_v36, 4 }
 0x2a3   : > { %v1862_v57 = vrot.slane %v1861_v33, 2 }
 0x2a4   : > { %v1878_v31 = vadd.f32 %v1877_v19, %v1876_v36 }
 0x2a5   : > { %v1863_v2 = vadd.f32 %v1862_v57, %v1861_v33 }
 0x2a6   : > { %v1879_v23 = vrot.slane %v1878_v31, 2 }
 0x2a7   : > { %v1864_v26 = vrot.slane %v1863_v2, 1 }
 0x2a8   : > { %v1880_v34 = vadd.f32 %v1879_v23, %v1878_v31 }
 0x2a9   : > { %v1865_v58 = vadd.f32 %v1864_v26, %v1863_v2 }
 0x2aa   : > { %v1881_v30 = vrot.slane %v1880_v34, 1 }
 0x2ac   : > { %v1882_v27 = vadd.f32 %v1881_v30, %v1880_v34 }
 0x2ae   : > { %v1942_v41 = vcombine.low %v1865_v58, %v1882_v27 }
 0x2b0   : > { %v1949_v14 = vrot.slane %v1942_v41, %v4379_v51 }
 0x2b2   : > { %v1956_v60 = vrot.slane %v1949_v14, %v4379_v51  ;;  %1970 = sbr.rel (%p3040_p1) target bundleno = 992 (0x3e0), region = 60 }
 0x2b4   : > { %v1960_v21 = vadd.f32 %v1956_v60, %v1592_v39 }
 0x2b6   : > { %1966 = vst.msk [vmem:[#allocation2 + $0x8] sm:$0x3] %vm1964_vm2, %v1960_v21 }
 0x2b7   : > { %v3519_v52 = vld [vmem:[%s5107_s6 + $0x78] sm:$0xff]   ;;  %v3523_v63 = vld [vmem:[%s5107_s6 + $0x70] sm:$0xff]   ;;  %v3527_v55 = vld [vmem:[%s5107_s6 + $0x68] sm:$0xff]  }
 0x2b8   : > { %v3520_v32 = vld [vmem:[%s5107_s6 + $0x38] sm:$0xff]   ;;  %3132 = vmatprep.subr.bf16.mxu0 %v3519_v52  ;;  %v3524_v12 = vld [vmem:[%s5107_s6 + $0x30] sm:$0xff]   ;;  %v3528_v47 = vld [vmem:[%s5107_s6 + $0x28] sm:$0xff]  }
 0x2b9   : > { %v3521_v51 = vld [vmem:[%s5107_s6 + $0xf8] sm:$0xff]   ;;  %3133 = vmatpush3.bf16.msra.mxu0 %v3520_v32  ;;  %v3525_v56 = vld [vmem:[%s5107_s6 + $0xf0] sm:$0xff]   ;;  %v3529_v48 = vld [vmem:[%s5107_s6 + $0xe8] sm:$0xff]  }
 0x2ba   : > { %v3522_v0 = vld [vmem:[%s5107_s6 + $0xb8] sm:$0xff]   ;;  %3154 = vmatprep.subr.bf16.mxu1 %v3521_v51  ;;  %3134 = vmatprep.subr.bf16.mxu0 %v3523_v63  ;;  %v3526_v13 = vld [vmem:[%s5107_s6 + $0xb0] sm:$0xff]   ;;  %v3530_v37 = vld [vmem:[%s5107_s6 + $0xa8] sm:$0xff]  }
 0x2bb   : > { %3155 = vmatpush3.bf16.msra.mxu1 %v3522_v0  ;;  %v3531_v49 = vld [vmem:[%s5107_s6 + $0x60] sm:$0xff]   ;;  %v3535_v22 = vld [vmem:[%s5107_s6 + $0x58] sm:$0xff]   ;;  %v3539_v50 = vld [vmem:[%s5107_s6 + $0x50] sm:$0xff]  }
 0x2bc   : > { %3156 = vmatprep.subr.bf16.mxu1 %v3525_v56  ;;  %v3532_v62 = vld [vmem:[%s5107_s6 + $0x20] sm:$0xff]   ;;  %v3536_v20 = vld [vmem:[%s5107_s6 + $0x18] sm:$0xff]   ;;  %v3540_v54 = vld [vmem:[%s5107_s6 + $0x10] sm:$0xff]  }
 0x2bd   : > { %3135 = vmatpush3.bf16.msra.mxu0 %v3524_v12  ;;  %v3533_v15 = vld [vmem:[%s5107_s6 + $0xe0] sm:$0xff]   ;;  %v3537_v6 = vld [vmem:[%s5107_s6 + $0xd8] sm:$0xff]   ;;  %v3541_v1 = vld [vmem:[%s5107_s6 + $0xd0] sm:$0xff]  }
 0x2be   : > { %3136 = vmatprep.subr.bf16.mxu0 %v3527_v55  ;;  %v3534_v45 = vld [vmem:[%s5107_s6 + $0xa0] sm:$0xff]   ;;  %v3538_v28 = vld [vmem:[%s5107_s6 + $0x98] sm:$0xff]   ;;  %v3542_v8 = vld [vmem:[%s5107_s6 + $0x90] sm:$0xff]  }
 0x2bf   : > { %3157 = vmatpush3.bf16.msra.mxu1 %v3526_v13  ;;  %v3543_v29 = vld [vmem:[%s5107_s6 + $0x48] sm:$0xff]   ;;  %v3547_v18 = vld [vmem:[%s5107_s6 + $0x40] sm:$0xff]   ;;  %v3551_v9 = vld [vmem:[%s5107_s6 + $0x178] sm:$0xff]  }
 0x2c0   : > { %3158 = vmatprep.subr.bf16.mxu1 %v3529_v48  ;;  %v3544_v7 = vld [vmem:[%s5107_s6 + $0x8] sm:$0xff]   ;;  %v3548_v16 = vld [vmem:[%s5107_s6] sm:$0xff]   ;;  %v3553_v24 = vld [vmem:[%s5107_s6 + $0x1f8] sm:$0xff]  }
 0x2c1   : > { %3137 = vmatpush3.bf16.msra.mxu0 %v3528_v47  ;;  %v3545_v38 = vld [vmem:[%s5107_s6 + $0xc8] sm:$0xff]   ;;  %v3549_v4 = vld [vmem:[%s5107_s6 + $0xc0] sm:$0xff]   ;;  %v5145_v35 = vld [vmem:[#allocation9_spill] sm:$0xff] }
 0x2c2   : > { %3138 = vmatprep.subr.bf16.mxu0 %v3531_v49  ;;  %v3546_v59 = vld [vmem:[%s5107_s6 + $0x88] sm:$0xff]   ;;  %v1971_v11 = vld [vmem:[#allocation2] sm:$0xff]  ;;  %v3552_v42 = vld [vmem:[%s5107_s6 + $0x138] sm:$0xff]  }
 0x2c3   : > { %3159 = vmatpush3.bf16.msra.mxu1 %v3530_v37  ;;  %v1973_v53 = vld [vmem:[%s5106_s5] sm:$0xff]  ;;  %v5146_v25 = vld [vmem:[#allocation8_spill] sm:$0xff]  ;;  %v3554_v19 = vld [vmem:[%s5107_s6 + $0x1b8] sm:$0xff]  }
 0x2c4   : > { %3160 = vmatprep.subr.bf16.mxu1 %v3533_v15  ;;  %v1975_v61 = vsub.f32 %v1971_v11, %v1973_v53  ;;  %v3550_v40 = vld [vmem:[%s5107_s6 + $0x80] sm:$0xff]   ;;  %v5147_v44 = vsub.s32 3, %v5146_v25  ;;  %v5148_v36 = vsub.s32 2, %v5146_v25  ;;  %v5149_v57 = vsub.s32 5, %v5146_v25  ;;  %v3555_v27 = vld [vmem:[%s5107_s6 + $0x170] sm:$0xff]   ;;  %v3559_v21 = vld [vmem:[%s5107_s6 + $0x168] sm:$0xff]  }
 0x2c5   : > { %3139 = vmatpush3.bf16.msra.mxu0 %v3532_v62  ;;  %v5144_v17 = vld [vmem:[#allocation10_spill] sm:$0xff]  ;;  %v5150_v2 = vsub.s32 7, %v5146_v25  ;;  %v3557_v41 = vld [vmem:[%s5107_s6 + $0x1f0] sm:$0xff]   ;;  %v3561_v52 = vld [vmem:[%s5107_s6 + $0x1e8] sm:$0xff]  }
 0x2c6   : > { %3140 = vmatprep.subr.bf16.mxu0 %v3535_v22  ;;  %v4880_v5 = vmul.f32 0.00390625, %v1975_v61  ;;  %v3556_v14 = vld [vmem:[%s5107_s6 + $0x130] sm:$0xff]   ;;  %v3560_v32 = vld [vmem:[%s5107_s6 + $0x128] sm:$0xff]   ;;  %v3563_v0 = vld [vmem:[%s5107_s6 + $0x160] sm:$0xff]  }
 0x2c7   : > { %3161 = vmatpush3.bf16.msra.mxu1 %v3534_v45  ;;  %v3558_v10 = vld [vmem:[%s5107_s6 + $0x1b0] sm:$0xff]   ;;  %v3562_v51 = vld [vmem:[%s5107_s6 + $0x1a8] sm:$0xff]   ;;  %v3565_v63 = vld [vmem:[%s5107_s6 + $0x1e0] sm:$0xff]  }
 0x2c8   : > { %3162 = vmatprep.subr.bf16.mxu1 %v3537_v6  ;;  %v1988_v43 = vrot.slane %v4880_v5, %v5144_v17  ;;  %v1984_v3 = vrot.slane %v4880_v5, %v5145_v35  ;;  %v1996_v46 = vrot.slane %v4880_v5, %v5147_v44  ;;  %v1992_v33 = vrot.slane %v4880_v5, %v5148_v36  ;;  %v3564_v12 = vld [vmem:[%s5107_s6 + $0x120] sm:$0xff]   ;;  %v3567_v13 = vld [vmem:[%s5107_s6 + $0x158] sm:$0xff]   ;;  %v3571_v37 = vld [vmem:[%s5107_s6 + $0x150] sm:$0xff]  }
 0x2c9   : > { %3141 = vmatpush3.bf16.msra.mxu0 %v3536_v20  ;;  %v2004_v31 = vrot.slane %v4880_v5, %v5149_v57  ;;  %v2012_v23 = vrot.slane %v4880_v5, %v5150_v2  ;;  %v3566_v56 = vld [vmem:[%s5107_s6 + $0x1a0] sm:$0xff]   ;;  %v3569_v55 = vld [vmem:[%s5107_s6 + $0x1d8] sm:$0xff]   ;;  %v3573_v49 = vld [vmem:[%s5107_s6 + $0x1d0] sm:$0xff]  }
 0x2ca   : > { %3142 = vmatprep.subr.bf16.mxu0 %v3539_v50  ;;  %v2032_v26 = vpack.c.bf16 %v1988_v43, %v1988_v43  ;;  %v2031_v34 = vpack.c.bf16 %v1984_v3, %v1984_v3  ;;  %v2034_v30 = vpack.c.bf16 %v1996_v46, %v1996_v46  ;;  %v2033_v58 = vpack.c.bf16 %v1992_v33, %v1992_v33  ;;  %v3568_v47 = vld [vmem:[%s5107_s6 + $0x118] sm:$0xff]   ;;  %v3572_v62 = vld [vmem:[%s5107_s6 + $0x110] sm:$0xff]   ;;  %v3575_v45 = vld [vmem:[%s5107_s6 + $0x148] sm:$0xff]  }
 0x2cb   : > { %3163 = vmatpush3.bf16.msra.mxu1 %v3538_v28  ;;  %v2036_v39 = vpack.c.bf16 %v2004_v31, %v2004_v31  ;;  %v2038_v60 = vpack.c.bf16 %v2012_v23, %v2012_v23  ;;  %v3570_v48 = vld [vmem:[%s5107_s6 + $0x198] sm:$0xff]   ;;  %v3574_v15 = vld [vmem:[%s5107_s6 + $0x190] sm:$0xff]   ;;  %v3577_v22 = vld [vmem:[%s5107_s6 + $0x1c8] sm:$0xff]  }
 0x2cc   : > { %3164 = vmatprep.subr.bf16.mxu1 %v3541_v1  ;;  %2714 = vmatprep.mubr.bf16.mxu0 %v2032_v26  ;;  %v3576_v20 = vld [vmem:[%s5107_s6 + $0x108] sm:$0xff]   ;;  %v3579_v28 = vld [vmem:[%s5107_s6 + $0x140] sm:$0xff]   ;;  %v5151_v1 = vsub.s32 4, %v5146_v25  ;;  %v3585_v11 = vld [vmem:[%s5107_s6 + $0x270] sm:$0xff]  }
 0x2cd   : > { %3143 = vmatpush3.bf16.msra.mxu0 %v3540_v54  ;;  %2754 = vmatprep.mubr.bf16.mxu1 %v2034_v30  ;;  %v3578_v6 = vld [vmem:[%s5107_s6 + $0x188] sm:$0xff]   ;;  %v3581_v50 = vld [vmem:[%s5107_s6 + $0x1c0] sm:$0xff]   ;;  %v3586_v53 = vld [vmem:[%s5107_s6 + $0x230] sm:$0xff]  }
 0x2ce   : > { %3144 = vmatprep.subr.bf16.mxu0 %v3543_v29  ;;  %v3580_v54 = vld [vmem:[%s5107_s6 + $0x100] sm:$0xff]   ;;  %v5152_v29 = vsub.s32 6, %v5146_v25  ;;  %v3587_v61 = vld [vmem:[%s5107_s6 + $0x268] sm:$0xff]   ;;  %v3591_v25 = vld [vmem:[%s5107_s6 + $0x258] sm:$0xff]  }
 0x2cf   : > { %3165 = vmatpush3.bf16.msra.mxu1 %v3542_v8  ;;  %v2000_v8 = vrot.slane %v4880_v5, %v5151_v1  ;;  %v3590_v43 = vld [vmem:[%s5107_s6 + $0x220] sm:$0xff]   ;;  %v3592_v46 = vld [vmem:[%s5107_s6 + $0x218] sm:$0xff]   ;;  %v3593_v36 = vld [vmem:[%s5107_s6 + $0x250] sm:$0xff]  }
 0x2d0   : > { %3166 = vmatprep.subr.bf16.mxu1 %v3545_v38  ;;  %v3582_v38 = vld [vmem:[%s5107_s6 + $0x180] sm:$0xff]   ;;  %v3595_v57 = vld [vmem:[%s5107_s6 + $0x248] sm:$0xff]  }
 0x2d1   : > { %3145 = vmatpush3.bf16.msra.mxu0 %v3544_v7  ;;  %v2008_v7 = vrot.slane %v4880_v5, %v5152_v29  ;;  %v1972_v5 = vld [vmem:[#allocation2 + $0x8] sm:$0x3]  ;;  %v3597_v31 = vld [vmem:[%s5107_s6 + $0x240] sm:$0xff]  }
 0x2d2   : > { %3146 = vmatprep.subr.bf16.mxu0 %v3547_v18  ;;  %v2035_v18 = vpack.c.bf16 %v2000_v8, %v2000_v8  ;;  %v3598_v23 = vld [vmem:[%s5107_s6 + $0x200] sm:$0xff]  }
 0x2d3   : > { %3167 = vmatpush3.bf16.msra.mxu1 %v3546_v59  ;;  %v3583_v59 = vld [vmem:[%s5107_s6 + $0x278] sm:$0xff]  }
 0x2d4   : > { %3168 = vmatprep.subr.bf16.mxu1 %v3549_v4  ;;  %v3584_v4 = vld [vmem:[%s5107_s6 + $0x238] sm:$0xff]  }
 0x2d5   : > { %3147 = vmatpush3.bf16.msra.mxu0 %v3548_v16  ;;  %v2037_v16 = vpack.c.bf16 %v2008_v7, %v2008_v7 }
 0x2d6   : > { %3176 = vmatprep.subr.bf16.mxu0 %v3551_v9  ;;  %v3589_v9 = vld [vmem:[%s5107_s6 + $0x260] sm:$0xff]  }
 0x2d7   : > { %3169 = vmatpush3.bf16.msra.mxu1 %v3550_v40  ;;  %v3588_v40 = vld [vmem:[%s5107_s6 + $0x228] sm:$0xff]  }
 0x2d8   : > { %3198 = vmatprep.subr.bf16.mxu1 %v3553_v24  ;;  %2715 = vmatmul.mubr.bf16.vlgmr.msra.gmra.mxu0 %v2031_v34  ;;  %v1974_v24 = vld [vmem:[%s5106_s5 + $0x8] sm:$0x3] }
 0x2d9   : > { %3177 = vmatpush3.bf16.msra.mxu0 %v3552_v42  ;;  %2794 = vmatprep.mubr.bf16.mxu0 %v2036_v39  ;;  %v1976_v3 = vsub.f32 %v1972_v5, %v1974_v24 }
 0x2da   : > { %2755 = vmatmul.mubr.bf16.vlgmr.msra.gmra.mxu1 %v2033_v58  ;;  %3178 = vmatprep.subr.bf16.mxu0 %v3555_v27 }
 0x2db   : > { %3199 = vmatpush3.bf16.msra.mxu1 %v3554_v19  ;;  %2834 = vmatprep.mubr.bf16.mxu1 %v2038_v60  ;;  %v1978_v44 = vmul.f32 0.00390625, %v1976_v3  ;;  %v3594_v19 = vld [vmem:[%s5107_s6 + $0x210] sm:$0xff]  }
 0x2dc   : > { %3200 = vmatprep.subr.bf16.mxu1 %v3557_v41 }
 0x2dd   : > { %3179 = vmatpush3.bf16.msra.mxu0 %v3556_v14  ;;  %v2020_v42 = vrot.slane %v1978_v44, %v5144_v17  ;;  %v3596_v17 = vld [vmem:[%s5107_s6 + $0x208] sm:$0xff]   ;;  %v2016_v2 = vrot.slane %v1978_v44, %v5145_v35 }
 0x2de   : > { %3180 = vmatprep.subr.bf16.mxu0 %v3559_v21 }
 0x2df   : > { %3201 = vmatpush3.bf16.msra.mxu1 %v3558_v10  ;;  %v2040_v33 = vpack.c.bf16 %v2020_v42, %v2020_v42  ;;  %v2039_v26 = vpack.c.bf16 %v2016_v2, %v2016_v2 }
 0x2e0   : > { %3202 = vmatprep.subr.bf16.mxu1 %v3561_v52 }
 0x2e1   : > { %3181 = vmatpush3.bf16.msra.mxu0 %v3560_v32 }
 0x2e2   : > { %3182 = vmatprep.subr.bf16.mxu0 %v3563_v0 }
 0x2e3   : > { %3203 = vmatpush3.bf16.msra.mxu1 %v3562_v51 }
 0x2e4   : > { %3204 = vmatprep.subr.bf16.mxu1 %v3565_v63 }
 0x2e5   : > { %3183 = vmatpush3.bf16.msra.mxu0 %v3564_v12 }
 0x2e6   : > { %3184 = vmatprep.subr.bf16.mxu0 %v3567_v13 }
 0x2e7   : > { %3205 = vmatpush3.bf16.msra.mxu1 %v3566_v56  ;;  %v2201_v56 = vld [vmem:[%s5108_s7] sm:$0x1] }
 0x2e8   : > { %3206 = vmatprep.subr.bf16.mxu1 %v3569_v55 }
 0x2e9   : > { %3185 = vmatpush3.bf16.msra.mxu0 %v3568_v47 }
 0x2ea   : > { %3186 = vmatprep.subr.bf16.mxu0 %v3571_v37 }
 0x2eb   : > { %3207 = vmatpush3.bf16.msra.mxu1 %v3570_v48 }
 0x2ec   : > { %3208 = vmatprep.subr.bf16.mxu1 %v3573_v49 }
 0x2ed   : > { %3187 = vmatpush3.bf16.msra.mxu0 %v3572_v62 }
 0x2ee   : > { %3188 = vmatprep.subr.bf16.mxu0 %v3575_v45 }
 0x2ef   : > { %3209 = vmatpush3.bf16.msra.mxu1 %v3574_v15 }
 0x2f0   : > { %3210 = vmatprep.subr.bf16.mxu1 %v3577_v22 }
 0x2f1   : > { %3189 = vmatpush3.bf16.msra.mxu0 %v3576_v20 }
 0x2f2   : > { %3190 = vmatprep.subr.bf16.mxu0 %v3579_v28 }
 0x2f3   : > { %3211 = vmatpush3.bf16.msra.mxu1 %v3578_v6 }
 0x2f4   : > { %3212 = vmatprep.subr.bf16.mxu1 %v3581_v50 }
 0x2f5   : > { %3191 = vmatpush3.bf16.msra.mxu0 %v3580_v54 }
 0x2f6   : > { %3220 = vmatprep.subr.bf16.mxu0 %v3583_v59 }
 0x2f7   : > { %3213 = vmatpush3.bf16.msra.mxu1 %v3582_v38 }
 0x2f8   : > { %2795 = vmatmul.mubr.bf16.vlgmr.msra.gmra.mxu0 %v2035_v18 }
 0x2f9   : > { %3221 = vmatpush3.bf16.msra.mxu0 %v3584_v4  ;;  %2874 = vmatprep.mubr.bf16.mxu0 %v2040_v33 }
 0x2fa   : > { %2835 = vmatmul.mubr.bf16.vlgmr.msra.gmra.mxu1 %v2037_v16  ;;  %3222 = vmatprep.subr.bf16.mxu0 %v3585_v11 }
 0x2fd   : > { %3223 = vmatpush3.bf16.msra.mxu0 %v3586_v53 }
 0x2fe   : > { %3224 = vmatprep.subr.bf16.mxu0 %v3587_v61 }
 0x301   : > { %3225 = vmatpush3.bf16.msra.mxu0 %v3588_v40 }
 0x302   : > { %3226 = vmatprep.subr.bf16.mxu0 %v3589_v9 }
 0x305   : > { %3227 = vmatpush3.bf16.msra.mxu0 %v3590_v43 }
 0x306   : > { %3228 = vmatprep.subr.bf16.mxu0 %v3591_v25 }
 0x309   : > { %3229 = vmatpush3.bf16.msra.mxu0 %v3592_v46 }
 0x30a   : > { %3230 = vmatprep.subr.bf16.mxu0 %v3593_v36 }
 0x30d   : > { %3231 = vmatpush3.bf16.msra.mxu0 %v3594_v19 }
 0x30e   : > { %3232 = vmatprep.subr.bf16.mxu0 %v3595_v57 }
 0x311   : > { %3233 = vmatpush3.bf16.msra.mxu0 %v3596_v17 }
 0x312   : > { %3234 = vmatprep.subr.bf16.mxu0 %v3597_v31 }
 0x315   : > { %3235 = vmatpush3.bf16.msra.mxu0 %v3598_v23 }
 0x318   : > { %2875 = vmatmul.mubr.bf16.vlgmr.msra.gmra.mxu0 %v2039_v26 }
 0x398   : > { %v3148_v34 = vpop.f32.mrf.mxu0 }
 0x39a   : > { %v3170_v30 = vpop.f32.mrf.mxu1  ;;  %v3149_v58 = vpop.f32.mrf.mxu0 }
 0x39b   : > { %v3150_v12 = vadd.f32 %v3149_v58, %v3148_v34 }
 0x39c   : > { %v3171_v27 = vpop.f32.mrf.mxu1  ;;  %v3151_v41 = vpop.f32.mrf.mxu0 }
 0x39d   : > { %v2717_v13 = vadd.f32 %v3150_v12, %v2201_v56  ;;  %v3172_v55 = vadd.f32 %v3171_v27, %v3170_v30 }
 0x39e   : > { %v3173_v14 = vpop.f32.mrf.mxu1  ;;  %v3152_v39 = vpop.f32.mrf.mxu0 }
 0x39f   : > { %v2757_v48 = vadd.f32 %v3172_v55, %v2717_v13 }
 0x3a0   : > { %v3174_v60 = vpop.f32.mrf.mxu1 }
 0x3b8   : > { %v3192_v10 = vpop.f32.mrf.mxu0 }
 0x3ba   : > { %v3214_v21 = vpop.f32.mrf.mxu1  ;;  %v3193_v35 = vpop.f32.mrf.mxu0 }
 0x3bb   : > { %v3194_v47 = vadd.f32 %v3193_v35, %v3192_v10 }
 0x3bc   : > { %v3215_v52 = vpop.f32.mrf.mxu1  ;;  %v3195_v32 = vpop.f32.mrf.mxu0 }
 0x3bd   : > { %v2797_v37 = vadd.f32 %v3194_v47, %v2757_v48  ;;  %v3216_v49 = vadd.f32 %v3215_v52, %v3214_v21 }
 0x3be   : > { %v3217_v51 = vpop.f32.mrf.mxu1  ;;  %v3196_v0 = vpop.f32.mrf.mxu0 }
 0x3bf   : > { %v2837_v45 = vadd.f32 %v3216_v49, %v2797_v37 }
 0x3c0   : > { %v3218_v63 = vpop.f32.mrf.mxu1 }
 0x3d8   : > { %v3236_v62 = vpop.f32.mrf.mxu0 }
 0x3da   : > { %v3237_v15 = vpop.f32.mrf.mxu0 }
 0x3db   : > { %v3238_v22 = vadd.f32 %v3237_v15, %v3236_v62 }
 0x3dc   : > { %v3239_v20 = vpop.f32.mrf.mxu0 }
 0x3dd   : > { %v2877_v6 = vadd.f32 %v3238_v22, %v2837_v45 }
 0x3de   : > { %v3240_v28 = vpop.f32.mrf.mxu0 }
 0x3df   : > { %2882 = vst [vmem:[%s3820_s20] sm:$0x1] %v2877_v6 }
 0x3e0 PF: > { %s3121_s19 = sshll.u32 %s3679_s9, 4  ;;  %s2896_s16 = sshll.u32 %s3820_s20, 4  ;;  %s2897_s16 = int_to_ptr.vmem [resolvable:$true] %s2896_s16 }
 0x3e1   : > { %s2894_s15 = scalar_lea.hbm %s5109_s8, %s3121_s19  ;;  %s2884_s26 = scalar_lea.sflag [#allocation4], %s319_s22 }
 0x3e2   : > { %s3599_s13 = scalar_lea.vmem %s2897_s16, 16  ;;  %s3696_s14 = smov [#allocation3]  }
 0x3e3   : > { %p3600_p2 = scmp.ne.s32.totalorder %s2897_s16, %s3599_s13  ;;  %s3603_s24 = sshll.u32 %s3696_s14, 4  ;;  %s3604_s24 = int_to_ptr.vmem [resolvable:$false] %s3603_s24 }
 0x3e4   : > { %s3605_s23 = scalar_lea.vmem %s3604_s24, 32  ;;  %p3606_p6 = scmp.lt.s32.totalorder %s2897_s16, %s3604_s24 }
 0x3e5   : > { %p3601_p4 = pnand %p3600_p2, %p3791_p3  ;;  %p3607_p7 = scmp.lt.s32.totalorder %s3605_s23, %s3599_s13 }
 0x3e7   : > { %p3602_p5 = pneg %p3601_p4  ;;  %p3608_p8 = por %p3607_p7, %p3606_p6 }
 0x3e9   : > { %p3609_p10 = pnand %p3608_p8, %p3602_p5 }
 0x3eb   : > { %3612 = shalt.err (!%p3609_p10)
}
 0x3ec   : > { %s3613_s9 = scalar_lea.hbm %s2894_s15, 16  ;;  %s3617_s19 = scalar_lea.hbm %s5109_s8, 32 }
 0x3ed   : > { %p3614_p11 = scmp.ne.s32.totalorder %s2894_s15, %s3613_s9  ;;  %p3618_p0 = scmp.lt.s32.totalorder %s2894_s15, %s5109_s8 }
 0x3ee   : > { %p3619_p1 = scmp.lt.s32.totalorder %s3617_s19, %s3613_s9 }
 0x3ef   : > { %p3615_p12 = pnand %p3614_p11, %p3791_p3 }
 0x3f0   : > { %p3620_p2 = por %p3619_p1, %p3618_p0 }
 0x3f1   : > { %p3616_p13 = pneg %p3615_p12 }
 0x3f3   : > { %p3621_p4 = pnand %p3620_p2, %p3616_p13 }
 0x3f5   : > { %3624 = shalt.err (!%p3621_p4)
}
 0x3f6   : > { %3263 = dma.vmem_to_hbm [thread:$0]  (%p3791_p3), %s2897_s16, 16, %s2894_s15, %s2884_s26  }
 0x3f7 PF: > { %p3269_p5 = scmp.ge.s32.totalorder %s3691_s12, 2  ;;  %s2908_s13 = sand.u32 1, %s3663_s27  }
 0x3f8   : > { %s2909_s14 = scalar_lea.sflag [#allocation4], %s2908_s13 }
 0x3f9   : > { %p3266_p6 = pnand %p3269_p5, %p3801_p9 }
 0x3fb   : > { %p3267_p7 = pneg %p3266_p6 }
 0x3fd   : > { %3658 = dma.done.wait (%p3267_p7), %s2909_s14, 16  }
 0x3fe   : > { %3660 = vsyncadd (%p3267_p7), %s2909_s14, 4294967280  ;;  %s21_s12 = sadd.s32 1, %s3691_s12   ;;  %s5153_s17 = sld [smem:[#allocation6_spill]] }
 0x3ff   : > { %p18_p8 = scmp.ge.s32.totalorder %s21_s12, 8   ;;  %s5154_s15 = sld [smem:[#allocation7_spill]] }
 0x400   : > { %s5155_s27 = smov %s3667_s28  ;;  %s5156_s28 = smov %s3671_s29 }
 0x401   : > { %s5157_s29 = smov %s3809_s21  ;;  %s5158_s30 = smov %s3683_s10 }
 0x402   : > { %s5159_s9 = smov %s3687_s11  ;;  %20 = sbr.rel (!%p18_p8) target bundleno = 5 (0x5), region = 95 }
 0x404   : > { %s5160_s10 = smov %s5153_s17 }
 0x405   : > { %s5161_s11 = smov %s5154_s15 }
 0x407   :  { %2913 = vsyncpa [#allocation4], 1 }
 0x408   :  { %2915 = vsyncpa [#allocation4 + $0x1], 1 }

</bundles_post_ra>
